<compile_context>
chip_gen: v6e
topology: v6e:2x2x1
jax: 0.10.0
libtpu: 0.0.40
codegen_flags: <defaults>
</compile_context>

<pallas_src>
import jax
import jax.numpy as jnp
from jax.experimental import pallas as pl
from jax.experimental.pallas import tpu as pltpu

# ----------------------------- configuration -------------------------------
B = 2              # batch
C_IN = 3           # input channels
IMG = 48           # input H = W  (original_size)
SAM_SIZE = 64      # image_encoder.img_size (stand-in for 1024)
DINO_SIZE = 32     # stand-in for the 896 dino resize target
HF = 8             # Hf = Wf: encoder token-grid side (stand-in for 64)
HW = HF * HF       # 64 tokens per image
OUT_CHANS = 64     # image_encoder.neck[0].out_channels (stand-in for 256)
DINO_DIM = 32      # dino_encoder.embed_dim (stand-in)
NUM_POS_FEATS = OUT_CHANS // 2   # PositionEmbeddingRandom(128) analogue
NUM_MASKS = 4      # mask_decoder output masks (stand-in)
ALPHA = 0.9
IMG_FLAT = IMG * IMG               # 2304 = 18 * 128 (lane-dense final store)
BHW = B * HW                       # 128 (full 128-lane vregs everywhere)


# ----------------------------- Pallas kernel --------------------------------
def _autosam_fused_kernel(x_ref, mwt_ref, mh_ref, qs_ref, ws_ref, qd_ref,
                          wd_ref, gamma_ref, beta_ref, wconv_ref, pe_ref,
                          wheads_ref, bmask_ref, biou_ref, up_ref,
                          mask_ref, iou_ref,
                          gs_ref, gd_ref):
    f32 = jnp.float32
    bf16 = jnp.bfloat16

    # --- 1. the two F.interpolate bilinear resizes (hoisted matmul form) ----
    # right multiply against [MwT_dino | MwT_sam] once for ALL (b, c) rows
    t = jnp.dot(x_ref[...], mwt_ref[...],
                preferred_element_type=f32)               # (B*C*48, 96)
    mh = mh_ref[...]                                      # (96, 48) bf16
    for b in range(B):
        for c in range(C_IN):
            bc = b * C_IN + c
            slab = t[bc * IMG:(bc + 1) * IMG, :].astype(bf16)      # (48, 96)
            prod = jnp.dot(mh, slab, preferred_element_type=f32)   # (96, 96)
            # diagonal blocks of `prod` ARE the two interpolated images (b, c)
            gd_ref[c * DINO_SIZE:(c + 1) * DINO_SIZE,
                   b * DINO_SIZE:(b + 1) * DINO_SIZE] = prod[:DINO_SIZE,
                                                             :DINO_SIZE]
            gs_ref[c * SAM_SIZE:(c + 1) * SAM_SIZE,
                   b * SAM_SIZE:(b + 1) * SAM_SIZE] = prod[DINO_SIZE:,
                                                           DINO_SIZE:]

    # --- 2. SAM image-encoder stand-in --------------------------------------
    # TODO(synk): the real SAM ViT image encoder is an external module; this
    # stand-in is a per-image linear spatial projection + channel/row mixing.
    hs = jnp.dot(gs_ref[...].astype(bf16), qs_ref[...],
                 preferred_element_type=f32)              # (C*64, B*HW=128)
    img = jnp.dot(ws_ref[...], hs.astype(bf16),
                  preferred_element_type=f32)             # (Cout, 128)

    # --- 3. DINOv2 stand-in (forward_features -> x_norm_patchtokens) --------
    # TODO(synk): the real DINOv2 encoder is an external module; stand-in is a
    # linear token projection followed by LayerNorm over the embed dim.
    hd = jnp.dot(gd_ref[...].astype(bf16), qd_ref[...],
                 preferred_element_type=f32)              # (C*32, 128)
    tok = jnp.dot(wd_ref[...], hd.astype(bf16),
                  preferred_element_type=f32)             # (Dd, 128)
    mu = jnp.mean(tok, axis=0, keepdims=True)
    var = jnp.mean((tok - mu) ** 2, axis=0, keepdims=True)
    tok = (tok - mu) * jax.lax.rsqrt(var + 1e-6)
    tok = tok * gamma_ref[...] + beta_ref[...]            # (Dd, 128)

    # --- 4. dino_conv (1x1, no bias) + exact GELU + alpha blend -------------
    y = jnp.dot(wconv_ref[...], tok.astype(bf16),
                preferred_element_type=f32)               # (Cout, 128)
    g = 0.5 * y * (1.0 + jax.lax.erf(y * 0.7071067811865476))
    fused = ALPHA * g + (1.0 - ALPHA) * img               # (Cout, 128)

    # --- 5. mask-decoder stand-in: PE add + merged mask/IoU heads -----------
    # TODO(synk): the real SAM mask decoder is an external module.
    src = fused + pe_ref[...]                             # (Cout, 128)
    heads = jnp.dot(wheads_ref[...], src.astype(bf16),
                    preferred_element_type=f32)           # (2*NM, 128)

    # --- 6. per-image epilogue: IoU pooling + 8x8 -> 48x48 bilinear upsample
    for b in range(B):
        lo, hi = b * HW, (b + 1) * HW
        mask_b = heads[0:NUM_MASKS, lo:hi] + bmask_ref[...]          # (NM, 64)
        iou_ref[b] = (jnp.mean(heads[NUM_MASKS:2 * NUM_MASKS, lo:hi],
                               axis=1, keepdims=True)
                      + biou_ref[...])                               # (NM, 1)
        mask_ref[b] = jnp.dot(mask_b.astype(bf16), up_ref[...],
                              preferred_element_type=f32)            # (NM, 2304)


# ----------------------------- kernel wrapper --------------------------------
_i2 = lambda i: (0, 0)
_i3 = lambda i: (0, 0, 0)


def autosam_forward(x, params):
    b = x.shape[0]
    assert (b, x.shape[1], x.shape[2], x.shape[3]) == (B, C_IN, IMG, IMG)
    x_rows = x.reshape(b * C_IN * IMG, IMG).astype(jnp.bfloat16)

    mask_flat, iou = pl.pallas_call(
        _autosam_fused_kernel,
        out_shape=(
            jax.ShapeDtypeStruct((B, NUM_MASKS, IMG_FLAT), jnp.float32),
            jax.ShapeDtypeStruct((B, NUM_MASKS, 1), jnp.float32)),
        grid=(1,),
        in_specs=[
            pl.BlockSpec((B * C_IN * IMG, IMG), _i2),       # x (row-stacked)
            pl.BlockSpec((IMG, DINO_SIZE + SAM_SIZE), _i2),  # [MwT_d | MwT_s]
            pl.BlockSpec((DINO_SIZE + SAM_SIZE, IMG), _i2),  # [Mh_d ; Mh_s]
            pl.BlockSpec((B * SAM_SIZE, BHW), _i2),          # kron(I_B, q_sam)
            pl.BlockSpec((OUT_CHANS, C_IN * SAM_SIZE), _i2),  # w_sam
            pl.BlockSpec((B * DINO_SIZE, BHW), _i2),         # kron(I_B, q_dino)
            pl.BlockSpec((DINO_DIM, C_IN * DINO_SIZE), _i2),  # w_dino
            pl.BlockSpec((DINO_DIM, 1), _i2),                # LN gamma
            pl.BlockSpec((DINO_DIM, 1), _i2),                # LN beta
            pl.BlockSpec((OUT_CHANS, DINO_DIM), _i2),        # dino_conv weight
            pl.BlockSpec((OUT_CHANS, BHW), _i2),             # PE (tiled per b)
            pl.BlockSpec((2 * NUM_MASKS, OUT_CHANS), _i2),   # merged heads
            pl.BlockSpec((NUM_MASKS, 1), _i2),               # mask bias
            pl.BlockSpec((NUM_MASKS, 1), _i2),               # iou bias
            pl.BlockSpec((HW, IMG_FLAT), _i2),               # bf16 upsample tbl
        ],
        out_specs=(
            pl.BlockSpec((B, NUM_MASKS, IMG_FLAT), _i3),
            pl.BlockSpec((B, NUM_MASKS, 1), _i3)),
        scratch_shapes=[
            pltpu.VMEM((C_IN * SAM_SIZE, B * SAM_SIZE), jnp.float32),
            pltpu.VMEM((C_IN * DINO_SIZE, B * DINO_SIZE), jnp.float32),
        ],
        compiler_params=pltpu.CompilerParams(
            dimension_semantics=("arbitrary",)),
    )(x_rows,
      params['mwt_cat'], params['mh_cat'],
      params['qs_blk'], params['w_sam'],
      params['qd_blk'], params['w_dino'],
      params['gamma'], params['beta'],
      params['w_conv'], params['pe_packed'],
      params['w_heads'], params['b_mask'], params['b_iou'],
      params['up_t'])

    mask = mask_flat.reshape(b, NUM_MASKS, IMG, IMG)
    iou_pred = iou.reshape(b, NUM_MASKS)
    return mask, iou_pred


# ----------------------------- static tables / params -----------------------
def _bilinear_matrix(out_size, in_size):
    # PyTorch F.interpolate(mode="bilinear", align_corners=False) as a matrix.
    scale = in_size / out_size
    dst = jnp.arange(out_size, dtype=jnp.float32)
    src = (dst + 0.5) * scale - 0.5
    src = jnp.maximum(src, 0.0)                 # torch clamps negative src to 0
    i0 = jnp.floor(src).astype(jnp.int32)
    i0 = jnp.minimum(i0, in_size - 1)
    i1 = jnp.minimum(i0 + 1, in_size - 1)
    w = src - i0.astype(jnp.float32)
    m = (jax.nn.one_hot(i0, in_size, dtype=jnp.float32) * (1.0 - w)[:, None]
         + jax.nn.one_hot(i1, in_size, dtype=jnp.float32) * w[:, None])
    return m                                     # (out_size, in_size)


def _position_embedding_cm(h, w, gaussian):
    # SAM PositionEmbeddingRandom.forward((h, w)), returned channel-major.
    y = (jnp.arange(h, dtype=jnp.float32) + 0.5) / h
    x = (jnp.arange(w, dtype=jnp.float32) + 0.5) / w
    gy = jnp.broadcast_to(y[:, None], (h, w))
    gx = jnp.broadcast_to(x[None, :], (h, w))
    coords = 2.0 * jnp.stack([gx, gy], axis=-1) - 1.0      # (h, w, 2)
    proj = 2.0 * jnp.pi * (coords @ gaussian)              # (h, w, npf)
    pe = jnp.concatenate([jnp.sin(proj), jnp.cos(proj)], axis=-1)
    return pe.reshape(h * w, -1).T                         # (2*npf, h*w)


def init_params(key):
    ks = jax.random.split(key, 10)
    bf16 = jnp.bfloat16

    # encoder stand-in weights
    q_sam = 0.05 * jax.random.normal(ks[0], (SAM_SIZE, HW), jnp.float32)
    w_sam = 0.05 * jax.random.normal(ks[1], (OUT_CHANS, C_IN * SAM_SIZE),
                                     jnp.float32)
    q_dino = 0.05 * jax.random.normal(ks[2], (DINO_SIZE, HW), jnp.float32)
    w_dino = 0.05 * jax.random.normal(ks[3], (DINO_DIM, C_IN * DINO_SIZE),
                                      jnp.float32)
    dino_gamma = jnp.ones((DINO_DIM,), jnp.float32)
    dino_beta = jnp.zeros((DINO_DIM,), jnp.float32)
    w_conv = 0.05 * jax.random.normal(ks[4], (OUT_CHANS, DINO_DIM), jnp.float32)
    pe_gaussian = jax.random.normal(ks[5], (2, NUM_POS_FEATS), jnp.float32)
    w_mask = 0.05 * jax.random.normal(ks[6], (OUT_CHANS, NUM_MASKS), jnp.float32)
    b_mask = 0.01 * jax.random.normal(ks[7], (NUM_MASKS,), jnp.float32)
    w_iou = 0.05 * jax.random.normal(ks[8], (OUT_CHANS, NUM_MASKS), jnp.float32)
    b_iou = 0.01 * jax.random.normal(ks[9], (NUM_MASKS,), jnp.float32)

    # bilinear resize tables (align_corners=False), concatenated, bf16 operands
    mh_d = _bilinear_matrix(DINO_SIZE, IMG)                 # (32, 48)
    mh_s = _bilinear_matrix(SAM_SIZE, IMG)                  # (64, 48)
    mwt_cat = jnp.concatenate([mh_d.T, mh_s.T], axis=1)     # (48, 96)
    mh_cat = jnp.concatenate([mh_d, mh_s], axis=0)          # (96, 48)

    # final 8x8 -> 48x48 bilinear upsample as one bf16 kron table (288 KB)
    u = _bilinear_matrix(IMG, HF)                            # (48, 8)
    up_t = jnp.kron(u, u).T                                  # (64, 2304)

    eye_b = jnp.eye(B, dtype=jnp.float32)
    pe = _position_embedding_cm(HF, HF, pe_gaussian)         # (Cout, HW)

    return {
        'mwt_cat': mwt_cat.astype(bf16),
        'mh_cat': mh_cat.astype(bf16),
        'qs_blk': jnp.kron(eye_b, q_sam).astype(bf16),       # (128, 128)
        'w_sam': w_sam.astype(bf16),                         # (64, 192)
        'qd_blk': jnp.kron(eye_b, q_dino).astype(bf16),      # (64, 128)
        'w_dino': w_dino.astype(bf16),                       # (32, 96)
        'gamma': dino_gamma.reshape(DINO_DIM, 1),
        'beta': dino_beta.reshape(DINO_DIM, 1),
        'w_conv': w_conv.astype(bf16),                       # (64, 32)
        'pe_packed': jnp.concatenate([pe] * B, axis=1),      # (64, 128) f32
        'w_heads': jnp.concatenate([w_mask.T, w_iou.T],
                                   axis=0).astype(bf16),     # (8, 64)
        'b_mask': b_mask.reshape(NUM_MASKS, 1),
        'b_iou': b_iou.reshape(NUM_MASKS, 1),
        'up_t': up_t.astype(bf16),                           # (64, 2304)
    }


if __name__ == "__main__":
    root = jax.random.PRNGKey(0)
    k_in, k_par = jax.random.split(root)
    x = jax.random.normal(k_in, (B, C_IN, IMG, IMG), jnp.float32)
    params = init_params(k_par)

    forward = jax.jit(autosam_forward)
    mask, iou_pred = forward(x, params)
    jax.block_until_ready((mask, iou_pred))

    assert mask.shape == (B, NUM_MASKS, IMG, IMG), mask.shape
    assert iou_pred.shape == (B, NUM_MASKS), iou_pred.shape
    assert bool(jnp.all(jnp.isfinite(mask))) and bool(jnp.all(jnp.isfinite(iou_pred)))
    print("KERNEL_OK")
</pallas_src>

<mosaic_0001>
module attributes {stable_mosaic.version = 11 : i64} {
  func.func @_autosam_fused_kernel(%arg0: i32, %arg1: memref<288x48xbf16, #tpu.memory_space<vmem>>, %arg2: memref<48x96xbf16, #tpu.memory_space<vmem>>, %arg3: memref<96x48xbf16, #tpu.memory_space<vmem>>, %arg4: memref<128x128xbf16, #tpu.memory_space<vmem>>, %arg5: memref<64x192xbf16, #tpu.memory_space<vmem>>, %arg6: memref<64x128xbf16, #tpu.memory_space<vmem>>, %arg7: memref<32x96xbf16, #tpu.memory_space<vmem>>, %arg8: memref<32x1xf32, #tpu.memory_space<vmem>>, %arg9: memref<32x1xf32, #tpu.memory_space<vmem>>, %arg10: memref<64x32xbf16, #tpu.memory_space<vmem>>, %arg11: memref<64x128xf32, #tpu.memory_space<vmem>>, %arg12: memref<8x64xbf16, #tpu.memory_space<vmem>>, %arg13: memref<4x1xf32, #tpu.memory_space<vmem>>, %arg14: memref<4x1xf32, #tpu.memory_space<vmem>>, %arg15: memref<64x2304xbf16, #tpu.memory_space<vmem>>, %arg16: memref<2x4x2304xf32, #tpu.memory_space<vmem>>, %arg17: memref<2x4x1xf32, #tpu.memory_space<vmem>>, %arg18: memref<192x128xf32, #tpu.memory_space<vmem>>, %arg19: memref<96x64xf32, #tpu.memory_space<vmem>>) attributes {dimension_semantics = [#tpu.dimension_semantics<arbitrary>], iteration_bounds = array<i64: 1>, scalar_prefetch = 0 : i64, scratch_operands = 2 : i64, tpu.core_type = #tpu.core_type<tc>, window_params = [{pipeline_mode = #tpu.pipeline_mode<synchronous>, transform_indices = @transform_0, window_bounds = array<i64: 288, 48>}, {pipeline_mode = #tpu.pipeline_mode<synchronous>, transform_indices = @transform_1, window_bounds = array<i64: 48, 96>}, {pipeline_mode = #tpu.pipeline_mode<synchronous>, transform_indices = @transform_2, window_bounds = array<i64: 96, 48>}, {pipeline_mode = #tpu.pipeline_mode<synchronous>, transform_indices = @transform_3, window_bounds = array<i64: 128, 128>}, {pipeline_mode = #tpu.pipeline_mode<synchronous>, transform_indices = @transform_4, window_bounds = array<i64: 64, 192>}, {pipeline_mode = #tpu.pipeline_mode<synchronous>, transform_indices = @transform_5, window_bounds = array<i64: 64, 128>}, {pipeline_mode = #tpu.pipeline_mode<synchronous>, transform_indices = @transform_6, window_bounds = array<i64: 32, 96>}, {pipeline_mode = #tpu.pipeline_mode<synchronous>, transform_indices = @transform_7, window_bounds = array<i64: 32, 1>}, {pipeline_mode = #tpu.pipeline_mode<synchronous>, transform_indices = @transform_8, window_bounds = array<i64: 32, 1>}, {pipeline_mode = #tpu.pipeline_mode<synchronous>, transform_indices = @transform_9, window_bounds = array<i64: 64, 32>}, {pipeline_mode = #tpu.pipeline_mode<synchronous>, transform_indices = @transform_10, window_bounds = array<i64: 64, 128>}, {pipeline_mode = #tpu.pipeline_mode<synchronous>, transform_indices = @transform_11, window_bounds = array<i64: 8, 64>}, {pipeline_mode = #tpu.pipeline_mode<synchronous>, transform_indices = @transform_12, window_bounds = array<i64: 4, 1>}, {pipeline_mode = #tpu.pipeline_mode<synchronous>, transform_indices = @transform_13, window_bounds = array<i64: 4, 1>}, {pipeline_mode = #tpu.pipeline_mode<synchronous>, transform_indices = @transform_14, window_bounds = array<i64: 64, 2304>}, {pipeline_mode = #tpu.pipeline_mode<synchronous>, transform_indices = @transform_15, window_bounds = array<i64: 2, 4, 2304>}, {pipeline_mode = #tpu.pipeline_mode<synchronous>, transform_indices = @transform_16, window_bounds = array<i64: 2, 4, 1>}]} {
    %c0 = arith.constant 0 : index
    %c0_0 = arith.constant 0 : index
    %0 = vector.load %arg1[%c0, %c0_0] : memref<288x48xbf16, #tpu.memory_space<vmem>>, vector<288x48xbf16>
    %c0_1 = arith.constant 0 : index
    %c0_2 = arith.constant 0 : index
    %1 = vector.load %arg2[%c0_1, %c0_2] : memref<48x96xbf16, #tpu.memory_space<vmem>>, vector<48x96xbf16>
    %cst = arith.constant dense<0.000000e+00> : vector<288x96xf32>
    %2 = tpu.matmul %0, %1, %cst {dimension_numbers = #tpu.dot_dimension_numbers<[1], [0], [0], [1], [0, 0, 1, 1], [], []>} : vector<288x48xbf16>, vector<48x96xbf16>, vector<288x96xf32> -> vector<288x96xf32>
    %c0_3 = arith.constant 0 : index
    %c0_4 = arith.constant 0 : index
    %3 = vector.load %arg3[%c0_3, %c0_4] : memref<96x48xbf16, #tpu.memory_space<vmem>>, vector<96x48xbf16>
    %4 = vector.extract_strided_slice %2 {offsets = [0, 0], sizes = [48, 96], strides = [1, 1]} : vector<288x96xf32> to vector<48x96xf32>
    %5 = arith.truncf %4 : vector<48x96xf32> to vector<48x96xbf16>
    %cst_5 = arith.constant dense<0.000000e+00> : vector<96x96xf32>
    %6 = tpu.matmul %3, %5, %cst_5 {dimension_numbers = #tpu.dot_dimension_numbers<[1], [0], [0], [1], [0, 0, 1, 1], [], []>} : vector<96x48xbf16>, vector<48x96xbf16>, vector<96x96xf32> -> vector<96x96xf32>
    %7 = vector.extract_strided_slice %6 {offsets = [0, 0], sizes = [32, 32], strides = [1, 1]} : vector<96x96xf32> to vector<32x32xf32>
    %c0_6 = arith.constant 0 : index
    %c0_7 = arith.constant 0 : index
    %8 = vector.load %arg19[%c0_6, %c0_7] : memref<96x64xf32, #tpu.memory_space<vmem>>, vector<32x32xf32>
    tpu.vector_store %arg19[%c0_6, %c0_7], %7 {strides = array<i32>} : memref<96x64xf32, #tpu.memory_space<vmem>>, vector<32x32xf32>,
    %9 = vector.extract_strided_slice %6 {offsets = [32, 32], sizes = [64, 64], strides = [1, 1]} : vector<96x96xf32> to vector<64x64xf32>
    %c0_8 = arith.constant 0 : index
    %c0_9 = arith.constant 0 : index
    %10 = vector.load %arg18[%c0_8, %c0_9] : memref<192x128xf32, #tpu.memory_space<vmem>>, vector<64x64xf32>
    tpu.vector_store %arg18[%c0_8, %c0_9], %9 {strides = array<i32>} : memref<192x128xf32, #tpu.memory_space<vmem>>, vector<64x64xf32>,
    %11 = vector.extract_strided_slice %2 {offsets = [48, 0], sizes = [48, 96], strides = [1, 1]} : vector<288x96xf32> to vector<48x96xf32>
    %12 = arith.truncf %11 : vector<48x96xf32> to vector<48x96xbf16>
    %cst_10 = arith.constant dense<0.000000e+00> : vector<96x96xf32>
    %13 = tpu.matmul %3, %12, %cst_10 {dimension_numbers = #tpu.dot_dimension_numbers<[1], [0], [0], [1], [0, 0, 1, 1], [], []>} : vector<96x48xbf16>, vector<48x96xbf16>, vector<96x96xf32> -> vector<96x96xf32>
    %14 = vector.extract_strided_slice %13 {offsets = [0, 0], sizes = [32, 32], strides = [1, 1]} : vector<96x96xf32> to vector<32x32xf32>
    %c32 = arith.constant 32 : index
    %c0_11 = arith.constant 0 : index
    %15 = vector.load %arg19[%c32, %c0_11] : memref<96x64xf32, #tpu.memory_space<vmem>>, vector<32x32xf32>
    tpu.vector_store %arg19[%c32, %c0_11], %14 {strides = array<i32>} : memref<96x64xf32, #tpu.memory_space<vmem>>, vector<32x32xf32>,
    %16 = vector.extract_strided_slice %13 {offsets = [32, 32], sizes = [64, 64], strides = [1, 1]} : vector<96x96xf32> to vector<64x64xf32>
    %c64 = arith.constant 64 : index
    %c0_12 = arith.constant 0 : index
    %17 = vector.load %arg18[%c64, %c0_12] : memref<192x128xf32, #tpu.memory_space<vmem>>, vector<64x64xf32>
    tpu.vector_store %arg18[%c64, %c0_12], %16 {strides = array<i32>} : memref<192x128xf32, #tpu.memory_space<vmem>>, vector<64x64xf32>,
    %18 = vector.extract_strided_slice %2 {offsets = [96, 0], sizes = [48, 96], strides = [1, 1]} : vector<288x96xf32> to vector<48x96xf32>
    %19 = arith.truncf %18 : vector<48x96xf32> to vector<48x96xbf16>
    %cst_13 = arith.constant dense<0.000000e+00> : vector<96x96xf32>
    %20 = tpu.matmul %3, %19, %cst_13 {dimension_numbers = #tpu.dot_dimension_numbers<[1], [0], [0], [1], [0, 0, 1, 1], [], []>} : vector<96x48xbf16>, vector<48x96xbf16>, vector<96x96xf32> -> vector<96x96xf32>
    %21 = vector.extract_strided_slice %20 {offsets = [0, 0], sizes = [32, 32], strides = [1, 1]} : vector<96x96xf32> to vector<32x32xf32>
    %c64_14 = arith.constant 64 : index
    %c0_15 = arith.constant 0 : index
    %22 = vector.load %arg19[%c64_14, %c0_15] : memref<96x64xf32, #tpu.memory_space<vmem>>, vector<32x32xf32>
    tpu.vector_store %arg19[%c64_14, %c0_15], %21 {strides = array<i32>} : memref<96x64xf32, #tpu.memory_space<vmem>>, vector<32x32xf32>,
    %23 = vector.extract_strided_slice %20 {offsets = [32, 32], sizes = [64, 64], strides = [1, 1]} : vector<96x96xf32> to vector<64x64xf32>
    %c128 = arith.constant 128 : index
    %c0_16 = arith.constant 0 : index
    %24 = vector.load %arg18[%c128, %c0_16] : memref<192x128xf32, #tpu.memory_space<vmem>>, vector<64x64xf32>
    tpu.vector_store %arg18[%c128, %c0_16], %23 {strides = array<i32>} : memref<192x128xf32, #tpu.memory_space<vmem>>, vector<64x64xf32>,
    %25 = vector.extract_strided_slice %2 {offsets = [144, 0], sizes = [48, 96], strides = [1, 1]} : vector<288x96xf32> to vector<48x96xf32>
    %26 = arith.truncf %25 : vector<48x96xf32> to vector<48x96xbf16>
    %cst_17 = arith.constant dense<0.000000e+00> : vector<96x96xf32>
    %27 = tpu.matmul %3, %26, %cst_17 {dimension_numbers = #tpu.dot_dimension_numbers<[1], [0], [0], [1], [0, 0, 1, 1], [], []>} : vector<96x48xbf16>, vector<48x96xbf16>, vector<96x96xf32> -> vector<96x96xf32>
    %28 = vector.extract_strided_slice %27 {offsets = [0, 0], sizes = [32, 32], strides = [1, 1]} : vector<96x96xf32> to vector<32x32xf32>
    %c0_18 = arith.constant 0 : index
    %c32_19 = arith.constant 32 : index
    %29 = vector.load %arg19[%c0_18, %c32_19] : memref<96x64xf32, #tpu.memory_space<vmem>>, vector<32x32xf32>
    tpu.vector_store %arg19[%c0_18, %c32_19], %28 {strides = array<i32>} : memref<96x64xf32, #tpu.memory_space<vmem>>, vector<32x32xf32>,
    %30 = vector.extract_strided_slice %27 {offsets = [32, 32], sizes = [64, 64], strides = [1, 1]} : vector<96x96xf32> to vector<64x64xf32>
    %c0_20 = arith.constant 0 : index
    %c64_21 = arith.constant 64 : index
    %31 = vector.load %arg18[%c0_20, %c64_21] : memref<192x128xf32, #tpu.memory_space<vmem>>, vector<64x64xf32>
    tpu.vector_store %arg18[%c0_20, %c64_21], %30 {strides = array<i32>} : memref<192x128xf32, #tpu.memory_space<vmem>>, vector<64x64xf32>,
    %32 = vector.extract_strided_slice %2 {offsets = [192, 0], sizes = [48, 96], strides = [1, 1]} : vector<288x96xf32> to vector<48x96xf32>
    %33 = arith.truncf %32 : vector<48x96xf32> to vector<48x96xbf16>
    %cst_22 = arith.constant dense<0.000000e+00> : vector<96x96xf32>
    %34 = tpu.matmul %3, %33, %cst_22 {dimension_numbers = #tpu.dot_dimension_numbers<[1], [0], [0], [1], [0, 0, 1, 1], [], []>} : vector<96x48xbf16>, vector<48x96xbf16>, vector<96x96xf32> -> vector<96x96xf32>
    %35 = vector.extract_strided_slice %34 {offsets = [0, 0], sizes = [32, 32], strides = [1, 1]} : vector<96x96xf32> to vector<32x32xf32>
    %c32_23 = arith.constant 32 : index
    %c32_24 = arith.constant 32 : index
    %36 = vector.load %arg19[%c32_23, %c32_24] : memref<96x64xf32, #tpu.memory_space<vmem>>, vector<32x32xf32>
    tpu.vector_store %arg19[%c32_23, %c32_24], %35 {strides = array<i32>} : memref<96x64xf32, #tpu.memory_space<vmem>>, vector<32x32xf32>,
    %37 = vector.extract_strided_slice %34 {offsets = [32, 32], sizes = [64, 64], strides = [1, 1]} : vector<96x96xf32> to vector<64x64xf32>
    %c64_25 = arith.constant 64 : index
    %c64_26 = arith.constant 64 : index
    %38 = vector.load %arg18[%c64_25, %c64_26] : memref<192x128xf32, #tpu.memory_space<vmem>>, vector<64x64xf32>
    tpu.vector_store %arg18[%c64_25, %c64_26], %37 {strides = array<i32>} : memref<192x128xf32, #tpu.memory_space<vmem>>, vector<64x64xf32>,
    %39 = vector.extract_strided_slice %2 {offsets = [240, 0], sizes = [48, 96], strides = [1, 1]} : vector<288x96xf32> to vector<48x96xf32>
    %40 = arith.truncf %39 : vector<48x96xf32> to vector<48x96xbf16>
    %cst_27 = arith.constant dense<0.000000e+00> : vector<96x96xf32>
    %41 = tpu.matmul %3, %40, %cst_27 {dimension_numbers = #tpu.dot_dimension_numbers<[1], [0], [0], [1], [0, 0, 1, 1], [], []>} : vector<96x48xbf16>, vector<48x96xbf16>, vector<96x96xf32> -> vector<96x96xf32>
    %42 = vector.extract_strided_slice %41 {offsets = [0, 0], sizes = [32, 32], strides = [1, 1]} : vector<96x96xf32> to vector<32x32xf32>
    %c64_28 = arith.constant 64 : index
    %c32_29 = arith.constant 32 : index
    %43 = vector.load %arg19[%c64_28, %c32_29] : memref<96x64xf32, #tpu.memory_space<vmem>>, vector<32x32xf32>
    tpu.vector_store %arg19[%c64_28, %c32_29], %42 {strides = array<i32>} : memref<96x64xf32, #tpu.memory_space<vmem>>, vector<32x32xf32>,
    %44 = vector.extract_strided_slice %41 {offsets = [32, 32], sizes = [64, 64], strides = [1, 1]} : vector<96x96xf32> to vector<64x64xf32>
    %c128_30 = arith.constant 128 : index
    %c64_31 = arith.constant 64 : index
    %45 = vector.load %arg18[%c128_30, %c64_31] : memref<192x128xf32, #tpu.memory_space<vmem>>, vector<64x64xf32>
    tpu.vector_store %arg18[%c128_30, %c64_31], %44 {strides = array<i32>} : memref<192x128xf32, #tpu.memory_space<vmem>>, vector<64x64xf32>,
    %c0_32 = arith.constant 0 : index
    %c0_33 = arith.constant 0 : index
    %46 = vector.load %arg18[%c0_32, %c0_33] : memref<192x128xf32, #tpu.memory_space<vmem>>, vector<192x128xf32>
    %47 = arith.truncf %46 : vector<192x128xf32> to vector<192x128xbf16>
    %c0_34 = arith.constant 0 : index
    %c0_35 = arith.constant 0 : index
    %48 = vector.load %arg4[%c0_34, %c0_35] : memref<128x128xbf16, #tpu.memory_space<vmem>>, vector<128x128xbf16>
    %cst_36 = arith.constant dense<0.000000e+00> : vector<192x128xf32>
    %49 = tpu.matmul %47, %48, %cst_36 {dimension_numbers = #tpu.dot_dimension_numbers<[1], [0], [0], [1], [0, 0, 1, 1], [], []>} : vector<192x128xbf16>, vector<128x128xbf16>, vector<192x128xf32> -> vector<192x128xf32>
    %c0_37 = arith.constant 0 : index
    %c0_38 = arith.constant 0 : index
    %50 = vector.load %arg5[%c0_37, %c0_38] : memref<64x192xbf16, #tpu.memory_space<vmem>>, vector<64x192xbf16>
    %51 = arith.truncf %49 : vector<192x128xf32> to vector<192x128xbf16>
    %cst_39 = arith.constant dense<0.000000e+00> : vector<64x128xf32>
    %52 = tpu.matmul %50, %51, %cst_39 {dimension_numbers = #tpu.dot_dimension_numbers<[1], [0], [0], [1], [0, 0, 1, 1], [], []>} : vector<64x192xbf16>, vector<192x128xbf16>, vector<64x128xf32> -> vector<64x128xf32>
    %c0_40 = arith.constant 0 : index
    %c0_41 = arith.constant 0 : index
    %53 = vector.load %arg19[%c0_40, %c0_41] : memref<96x64xf32, #tpu.memory_space<vmem>>, vector<96x64xf32>
    %54 = arith.truncf %53 : vector<96x64xf32> to vector<96x64xbf16>
    %c0_42 = arith.constant 0 : index
    %c0_43 = arith.constant 0 : index
    %55 = vector.load %arg6[%c0_42, %c0_43] : memref<64x128xbf16, #tpu.memory_space<vmem>>, vector<64x128xbf16>
    %cst_44 = arith.constant dense<0.000000e+00> : vector<96x128xf32>
    %56 = tpu.matmul %54, %55, %cst_44 {dimension_numbers = #tpu.dot_dimension_numbers<[1], [0], [0], [1], [0, 0, 1, 1], [], []>} : vector<96x64xbf16>, vector<64x128xbf16>, vector<96x128xf32> -> vector<96x128xf32>
    %c0_45 = arith.constant 0 : index
    %c0_46 = arith.constant 0 : index
    %57 = vector.load %arg7[%c0_45, %c0_46] : memref<32x96xbf16, #tpu.memory_space<vmem>>, vector<32x96xbf16>
    %58 = arith.truncf %56 : vector<96x128xf32> to vector<96x128xbf16>
    %cst_47 = arith.constant dense<0.000000e+00> : vector<32x128xf32>
    %59 = tpu.matmul %57, %58, %cst_47 {dimension_numbers = #tpu.dot_dimension_numbers<[1], [0], [0], [1], [0, 0, 1, 1], [], []>} : vector<32x96xbf16>, vector<96x128xbf16>, vector<32x128xf32> -> vector<32x128xf32>
    %cst_48 = arith.constant dense<0.000000e+00> : vector<128xf32>
    %60 = vector.multi_reduction <add>, %59, %cst_48 [0] : vector<32x128xf32> to vector<128xf32>
    %61 = vector.shape_cast %60 : vector<128xf32> to vector<1x128xf32>
    %cst_49 = arith.constant 3.200000e+01 : f32
    %62 = vector.broadcast %cst_49 : f32 to vector<1x128xf32>
    %63 = arith.divf %61, %62 : vector<1x128xf32>
    %64 = vector.broadcast %63 : vector<1x128xf32> to vector<32x128xf32>
    %65 = arith.subf %59, %64 : vector<32x128xf32>
    %66 = arith.mulf %65, %65 : vector<32x128xf32>
    %cst_50 = arith.constant dense<0.000000e+00> : vector<128xf32>
    %67 = vector.multi_reduction <add>, %66, %cst_50 [0] : vector<32x128xf32> to vector<128xf32>
    %68 = vector.shape_cast %67 : vector<128xf32> to vector<1x128xf32>
    %cst_51 = arith.constant 3.200000e+01 : f32
    %69 = vector.broadcast %cst_51 : f32 to vector<1x128xf32>
    %70 = arith.divf %68, %69 : vector<1x128xf32>
    %71 = vector.broadcast %63 : vector<1x128xf32> to vector<32x128xf32>
    %72 = arith.subf %59, %71 : vector<32x128xf32>
    %cst_52 = arith.constant 9.99999997E-7 : f32
    %73 = vector.broadcast %cst_52 : f32 to vector<1x128xf32>
    %74 = arith.addf %70, %73 : vector<1x128xf32>
    %75 = math.rsqrt %74 : vector<1x128xf32>
    %76 = vector.broadcast %75 : vector<1x128xf32> to vector<32x128xf32>
    %77 = arith.mulf %72, %76 : vector<32x128xf32>
    %c0_53 = arith.constant 0 : index
    %c0_54 = arith.constant 0 : index
    %78 = vector.load %arg8[%c0_53, %c0_54] : memref<32x1xf32, #tpu.memory_space<vmem>>, vector<32x1xf32>
    %79 = vector.broadcast %78 : vector<32x1xf32> to vector<32x128xf32>
    %80 = arith.mulf %77, %79 : vector<32x128xf32>
    %c0_55 = arith.constant 0 : index
    %c0_56 = arith.constant 0 : index
    %81 = vector.load %arg9[%c0_55, %c0_56] : memref<32x1xf32, #tpu.memory_space<vmem>>, vector<32x1xf32>
    %82 = vector.broadcast %81 : vector<32x1xf32> to vector<32x128xf32>
    %83 = arith.addf %80, %82 : vector<32x128xf32>
    %c0_57 = arith.constant 0 : index
    %c0_58 = arith.constant 0 : index
    %84 = vector.load %arg10[%c0_57, %c0_58] : memref<64x32xbf16, #tpu.memory_space<vmem>>, vector<64x32xbf16>
    %85 = arith.truncf %83 : vector<32x128xf32> to vector<32x128xbf16>
    %cst_59 = arith.constant dense<0.000000e+00> : vector<64x128xf32>
    %86 = tpu.matmul %84, %85, %cst_59 {dimension_numbers = #tpu.dot_dimension_numbers<[1], [0], [0], [1], [0, 0, 1, 1], [], []>} : vector<64x32xbf16>, vector<32x128xbf16>, vector<64x128xf32> -> vector<64x128xf32>
    %cst_60 = arith.constant 5.000000e-01 : f32
    %87 = vector.broadcast %cst_60 : f32 to vector<64x128xf32>
    %88 = arith.mulf %87, %86 : vector<64x128xf32>
    %cst_61 = arith.constant 0.707106769 : f32
    %89 = vector.broadcast %cst_61 : f32 to vector<64x128xf32>
    %90 = arith.mulf %86, %89 : vector<64x128xf32>
    %91 = math.erf %90 : vector<64x128xf32>
    %cst_62 = arith.constant 1.000000e+00 : f32
    %92 = vector.broadcast %cst_62 : f32 to vector<64x128xf32>
    %93 = arith.addf %92, %91 : vector<64x128xf32>
    %94 = arith.mulf %88, %93 : vector<64x128xf32>
    %cst_63 = arith.constant 0.899999976 : f32
    %95 = vector.broadcast %cst_63 : f32 to vector<64x128xf32>
    %96 = arith.mulf %95, %94 : vector<64x128xf32>
    %cst_64 = arith.constant 1.000000e-01 : f32
    %97 = vector.broadcast %cst_64 : f32 to vector<64x128xf32>
    %98 = arith.mulf %97, %52 : vector<64x128xf32>
    %99 = arith.addf %96, %98 : vector<64x128xf32>
    %c0_65 = arith.constant 0 : index
    %c0_66 = arith.constant 0 : index
    %100 = vector.load %arg11[%c0_65, %c0_66] : memref<64x128xf32, #tpu.memory_space<vmem>>, vector<64x128xf32>
    %101 = arith.addf %99, %100 : vector<64x128xf32>
    %c0_67 = arith.constant 0 : index
    %c0_68 = arith.constant 0 : index
    %102 = vector.load %arg12[%c0_67, %c0_68] : memref<8x64xbf16, #tpu.memory_space<vmem>>, vector<8x64xbf16>
    %103 = arith.truncf %101 : vector<64x128xf32> to vector<64x128xbf16>
    %cst_69 = arith.constant dense<0.000000e+00> : vector<8x128xf32>
    %104 = tpu.matmul %102, %103, %cst_69 {dimension_numbers = #tpu.dot_dimension_numbers<[1], [0], [0], [1], [0, 0, 1, 1], [], []>} : vector<8x64xbf16>, vector<64x128xbf16>, vector<8x128xf32> -> vector<8x128xf32>
    %105 = vector.extract_strided_slice %104 {offsets = [0, 0], sizes = [4, 64], strides = [1, 1]} : vector<8x128xf32> to vector<4x64xf32>
    %c0_70 = arith.constant 0 : index
    %c0_71 = arith.constant 0 : index
    %106 = vector.load %arg13[%c0_70, %c0_71] : memref<4x1xf32, #tpu.memory_space<vmem>>, vector<4x1xf32>
    %107 = vector.broadcast %106 : vector<4x1xf32> to vector<4x64xf32>
    %108 = arith.addf %105, %107 : vector<4x64xf32>
    %109 = vector.extract_strided_slice %104 {offsets = [4, 0], sizes = [4, 64], strides = [1, 1]} : vector<8x128xf32> to vector<4x64xf32>
    %cst_72 = arith.constant dense<0.000000e+00> : vector<4xf32>
    %110 = vector.multi_reduction <add>, %109, %cst_72 [1] : vector<4x64xf32> to vector<4xf32>
    %111 = vector.shape_cast %110 : vector<4xf32> to vector<4x1xf32>
    %cst_73 = arith.constant 6.400000e+01 : f32
    %112 = vector.broadcast %cst_73 : f32 to vector<4x1xf32>
    %113 = arith.divf %111, %112 : vector<4x1xf32>
    %c0_74 = arith.constant 0 : index
    %c0_75 = arith.constant 0 : index
    %114 = vector.load %arg14[%c0_74, %c0_75] : memref<4x1xf32, #tpu.memory_space<vmem>>, vector<4x1xf32>
    %115 = arith.addf %113, %114 : vector<4x1xf32>
    %c0_76 = arith.constant 0 : index
    %c0_77 = arith.constant 0 : index
    %c0_78 = arith.constant 0 : index
    %116 = vector.load %arg17[%c0_76, %c0_77, %c0_78] : memref<2x4x1xf32, #tpu.memory_space<vmem>>, vector<1x4x1xf32>
    %117 = vector.shape_cast %116 : vector<1x4x1xf32> to vector<4x1xf32>
    %118 = vector.shape_cast %115 : vector<4x1xf32> to vector<1x4x1xf32>
    tpu.vector_store %arg17[%c0_76, %c0_77, %c0_78], %118 {strides = array<i32>} : memref<2x4x1xf32, #tpu.memory_space<vmem>>, vector<1x4x1xf32>,
    %119 = arith.truncf %108 : vector<4x64xf32> to vector<4x64xbf16>
    %c0_79 = arith.constant 0 : index
    %c0_80 = arith.constant 0 : index
    %120 = vector.load %arg15[%c0_79, %c0_80] : memref<64x2304xbf16, #tpu.memory_space<vmem>>, vector<64x2304xbf16>
    %cst_81 = arith.constant dense<0.000000e+00> : vector<4x2304xf32>
    %121 = tpu.matmul %119, %120, %cst_81 {dimension_numbers = #tpu.dot_dimension_numbers<[1], [0], [0], [1], [0, 0, 1, 1], [], []>} : vector<4x64xbf16>, vector<64x2304xbf16>, vector<4x2304xf32> -> vector<4x2304xf32>
    %c0_82 = arith.constant 0 : index
    %c0_83 = arith.constant 0 : index
    %c0_84 = arith.constant 0 : index
    %122 = vector.load %arg16[%c0_82, %c0_83, %c0_84] : memref<2x4x2304xf32, #tpu.memory_space<vmem>>, vector<1x4x2304xf32>
    %123 = vector.shape_cast %122 : vector<1x4x2304xf32> to vector<4x2304xf32>
    %124 = vector.shape_cast %121 : vector<4x2304xf32> to vector<1x4x2304xf32>
    tpu.vector_store %arg16[%c0_82, %c0_83, %c0_84], %124 {strides = array<i32>} : memref<2x4x2304xf32, #tpu.memory_space<vmem>>, vector<1x4x2304xf32>,
    %125 = vector.extract_strided_slice %104 {offsets = [0, 64], sizes = [4, 64], strides = [1, 1]} : vector<8x128xf32> to vector<4x64xf32>
    %c0_85 = arith.constant 0 : index
    %c0_86 = arith.constant 0 : index
    %126 = vector.load %arg13[%c0_85, %c0_86] : memref<4x1xf32, #tpu.memory_space<vmem>>, vector<4x1xf32>
    %127 = vector.broadcast %126 : vector<4x1xf32> to vector<4x64xf32>
    %128 = arith.addf %125, %127 : vector<4x64xf32>
    %129 = vector.extract_strided_slice %104 {offsets = [4, 64], sizes = [4, 64], strides = [1, 1]} : vector<8x128xf32> to vector<4x64xf32>
    %cst_87 = arith.constant dense<0.000000e+00> : vector<4xf32>
    %130 = vector.multi_reduction <add>, %129, %cst_87 [1] : vector<4x64xf32> to vector<4xf32>
    %131 = vector.shape_cast %130 : vector<4xf32> to vector<4x1xf32>
    %cst_88 = arith.constant 6.400000e+01 : f32
    %132 = vector.broadcast %cst_88 : f32 to vector<4x1xf32>
    %133 = arith.divf %131, %132 : vector<4x1xf32>
    %c0_89 = arith.constant 0 : index
    %c0_90 = arith.constant 0 : index
    %134 = vector.load %arg14[%c0_89, %c0_90] : memref<4x1xf32, #tpu.memory_space<vmem>>, vector<4x1xf32>
    %135 = arith.addf %133, %134 : vector<4x1xf32>
    %c1 = arith.constant 1 : index
    %c0_91 = arith.constant 0 : index
    %c0_92 = arith.constant 0 : index
    %136 = vector.load %arg17[%c1, %c0_91, %c0_92] : memref<2x4x1xf32, #tpu.memory_space<vmem>>, vector<1x4x1xf32>
    %137 = vector.shape_cast %136 : vector<1x4x1xf32> to vector<4x1xf32>
    %138 = vector.shape_cast %135 : vector<4x1xf32> to vector<1x4x1xf32>
    tpu.vector_store %arg17[%c1, %c0_91, %c0_92], %138 {strides = array<i32>} : memref<2x4x1xf32, #tpu.memory_space<vmem>>, vector<1x4x1xf32>,
    %139 = arith.truncf %128 : vector<4x64xf32> to vector<4x64xbf16>
    %c0_93 = arith.constant 0 : index
    %c0_94 = arith.constant 0 : index
    %140 = vector.load %arg15[%c0_93, %c0_94] : memref<64x2304xbf16, #tpu.memory_space<vmem>>, vector<64x2304xbf16>
    %cst_95 = arith.constant dense<0.000000e+00> : vector<4x2304xf32>
    %141 = tpu.matmul %139, %140, %cst_95 {dimension_numbers = #tpu.dot_dimension_numbers<[1], [0], [0], [1], [0, 0, 1, 1], [], []>} : vector<4x64xbf16>, vector<64x2304xbf16>, vector<4x2304xf32> -> vector<4x2304xf32>
    %c1_96 = arith.constant 1 : index
    %c0_97 = arith.constant 0 : index
    %c0_98 = arith.constant 0 : index
    %142 = vector.load %arg16[%c1_96, %c0_97, %c0_98] : memref<2x4x2304xf32, #tpu.memory_space<vmem>>, vector<1x4x2304xf32>
    %143 = vector.shape_cast %142 : vector<1x4x2304xf32> to vector<4x2304xf32>
    %144 = vector.shape_cast %141 : vector<4x2304xf32> to vector<1x4x2304xf32>
    tpu.vector_store %arg16[%c1_96, %c0_97, %c0_98], %144 {strides = array<i32>} : memref<2x4x2304xf32, #tpu.memory_space<vmem>>, vector<1x4x2304xf32>,
    return
  }
  func.func @transform_0(%arg0: i32) -> (i32, i32) {
    %c0_i32 = arith.constant 0 : i32
    %c0_i32_0 = arith.constant 0 : i32
    %c0_i32_1 = arith.constant 0 : i32
    return %c0_i32, %c0_i32_0 : i32, i32
  }
  func.func @transform_1(%arg0: i32) -> (i32, i32) {
    %c0_i32 = arith.constant 0 : i32
    %c0_i32_0 = arith.constant 0 : i32
    %c0_i32_1 = arith.constant 0 : i32
    return %c0_i32, %c0_i32_0 : i32, i32
  }
  func.func @transform_2(%arg0: i32) -> (i32, i32) {
    %c0_i32 = arith.constant 0 : i32
    %c0_i32_0 = arith.constant 0 : i32
    %c0_i32_1 = arith.constant 0 : i32
    return %c0_i32, %c0_i32_0 : i32, i32
  }
  func.func @transform_3(%arg0: i32) -> (i32, i32) {
    %c0_i32 = arith.constant 0 : i32
    %c0_i32_0 = arith.constant 0 : i32
    %c0_i32_1 = arith.constant 0 : i32
    return %c0_i32, %c0_i32_0 : i32, i32
  }
  func.func @transform_4(%arg0: i32) -> (i32, i32) {
    %c0_i32 = arith.constant 0 : i32
    %c0_i32_0 = arith.constant 0 : i32
    %c0_i32_1 = arith.constant 0 : i32
    return %c0_i32, %c0_i32_0 : i32, i32
  }
  func.func @transform_5(%arg0: i32) -> (i32, i32) {
    %c0_i32 = arith.constant 0 : i32
    %c0_i32_0 = arith.constant 0 : i32
    %c0_i32_1 = arith.constant 0 : i32
    return %c0_i32, %c0_i32_0 : i32, i32
  }
  func.func @transform_6(%arg0: i32) -> (i32, i32) {
    %c0_i32 = arith.constant 0 : i32
    %c0_i32_0 = arith.constant 0 : i32
    %c0_i32_1 = arith.constant 0 : i32
    return %c0_i32, %c0_i32_0 : i32, i32
  }
  func.func @transform_7(%arg0: i32) -> (i32, i32) {
    %c0_i32 = arith.constant 0 : i32
    %c0_i32_0 = arith.constant 0 : i32
    %c0_i32_1 = arith.constant 0 : i32
    return %c0_i32, %c0_i32_0 : i32, i32
  }
  func.func @transform_8(%arg0: i32) -> (i32, i32) {
    %c0_i32 = arith.constant 0 : i32
    %c0_i32_0 = arith.constant 0 : i32
    %c0_i32_1 = arith.constant 0 : i32
    return %c0_i32, %c0_i32_0 : i32, i32
  }
  func.func @transform_9(%arg0: i32) -> (i32, i32) {
    %c0_i32 = arith.constant 0 : i32
    %c0_i32_0 = arith.constant 0 : i32
    %c0_i32_1 = arith.constant 0 : i32
    return %c0_i32, %c0_i32_0 : i32, i32
  }
  func.func @transform_10(%arg0: i32) -> (i32, i32) {
    %c0_i32 = arith.constant 0 : i32
    %c0_i32_0 = arith.constant 0 : i32
    %c0_i32_1 = arith.constant 0 : i32
    return %c0_i32, %c0_i32_0 : i32, i32
  }
  func.func @transform_11(%arg0: i32) -> (i32, i32) {
    %c0_i32 = arith.constant 0 : i32
    %c0_i32_0 = arith.constant 0 : i32
    %c0_i32_1 = arith.constant 0 : i32
    return %c0_i32, %c0_i32_0 : i32, i32
  }
  func.func @transform_12(%arg0: i32) -> (i32, i32) {
    %c0_i32 = arith.constant 0 : i32
    %c0_i32_0 = arith.constant 0 : i32
    %c0_i32_1 = arith.constant 0 : i32
    return %c0_i32, %c0_i32_0 : i32, i32
  }
  func.func @transform_13(%arg0: i32) -> (i32, i32) {
    %c0_i32 = arith.constant 0 : i32
    %c0_i32_0 = arith.constant 0 : i32
    %c0_i32_1 = arith.constant 0 : i32
    return %c0_i32, %c0_i32_0 : i32, i32
  }
  func.func @transform_14(%arg0: i32) -> (i32, i32) {
    %c0_i32 = arith.constant 0 : i32
    %c0_i32_0 = arith.constant 0 : i32
    %c0_i32_1 = arith.constant 0 : i32
    return %c0_i32, %c0_i32_0 : i32, i32
  }
  func.func @transform_15(%arg0: i32) -> (i32, i32, i32) {
    %c0_i32 = arith.constant 0 : i32
    %c0_i32_0 = arith.constant 0 : i32
    %c0_i32_1 = arith.constant 0 : i32
    %c0_i32_2 = arith.constant 0 : i32
    return %c0_i32, %c0_i32_0, %c0_i32_1 : i32, i32, i32
  }
  func.func @transform_16(%arg0: i32) -> (i32, i32, i32) {
    %c0_i32 = arith.constant 0 : i32
    %c0_i32_0 = arith.constant 0 : i32
    %c0_i32_1 = arith.constant 0 : i32
    %c0_i32_2 = arith.constant 0 : i32
    return %c0_i32, %c0_i32_0, %c0_i32_1 : i32, i32, i32
  }
}

</mosaic_0001>

<bundles_post_ra>
// kernel: autosam_forward.1
= control target key start
LH: loop header
LB: loop body
LE: loop exit
PB: predicated region body
PF: predicated region fallthrough
CT: control target
= control target key end

     0   :  { %s6257_s0 = inlined_call_operand.vmem [shape: bf16[288,48], index: 0, kind: input, shape index: {}]   ;;  %s6258_s1 = inlined_call_operand.hbm [shape: bf16[48,96], index: 1, kind: input, shape index: {}]   ;;  %s6259_s2 = inlined_call_operand.vmem [shape: bf16[96,48], index: 2, kind: input, shape index: {}]   ;;  %s6260_s3 = inlined_call_operand.vmem [shape: bf16[128,128], index: 3, kind: input, shape index: {}]   ;;  %s6261_s4 = inlined_call_operand.hbm [shape: bf16[64,192], index: 4, kind: input, shape index: {}]   ;;  %s6262_s5 = inlined_call_operand.hbm [shape: bf16[64,128], index: 5, kind: input, shape index: {}]   ;;  %s6263_s6 = inlined_call_operand.hbm [shape: bf16[32,96], index: 6, kind: input, shape index: {}]   ;;  %s6264_s7 = inlined_call_operand.vmem [shape: f32[32,1], index: 7, kind: input, shape index: {}]   ;;  %s6265_s8 = inlined_call_operand.vmem [shape: f32[32,1], index: 8, kind: input, shape index: {}]   ;;  %s6266_s9 = inlined_call_operand.vmem [shape: bf16[64,32], index: 9, kind: input, shape index: {}]   ;;  %s6267_s10 = inlined_call_operand.hbm [shape: f32[64,128], index: 10, kind: input, shape index: {}]   ;;  %s6268_s11 = inlined_call_operand.vmem [shape: bf16[8,64], index: 11, kind: input, shape index: {}]   ;;  %s6269_s12 = inlined_call_operand.vmem [shape: f32[4,1], index: 12, kind: input, shape index: {}]   ;;  %s6270_s13 = inlined_call_operand.vmem [shape: f32[4,1], index: 13, kind: input, shape index: {}]   ;;  %s6271_s14 = inlined_call_operand.vmem [shape: bf16[64,2304], index: 14, kind: input, shape index: {}]   ;;  %s6272_s15 = inlined_call_operand.vmem [shape: f32[2,4,2304], index: 15, kind: output, shape index: {0}]   ;;  %s6273_s16 = inlined_call_operand.vmem [shape: f32[2,4,1], index: 16, kind: output, shape index: {1}]  }
   0x1   :  { %6285 = sst [smem:[#allocation23_spill]] %s6257_s0 }
   0x2   :  { %22 = vsyncpa [#allocation5], 0 }
   0x3   :  { %23 = vsyncpa [#allocation7], 0 }
   0x4   :  { %24 = vsyncpa [#allocation10], 0  ;;  %s5028_s21 = smov [#allocation6]  }
   0x5   :  { %s48_s22 = sshll.u32 %s5028_s21, 4  ;;  %s49_s22 = int_to_ptr.vmem [resolvable:$true] %s48_s22 }
   0x6   :  { %s4930_s23 = scalar_lea.vmem %s49_s22, 1024  ;;  %p4935_p1 = scmp.lt.s32.totalorder %s49_s22, %s49_s22 }
   0x7   :  { %p4931_p0 = scmp.ne.s32.totalorder %s49_s22, %s4930_s23  ;;  %p4936_p2 = scmp.lt.s32.totalorder %s4930_s23, %s4930_s23 }
   0x9   :  { %p4937_p3 = por %p4936_p2, %p4935_p1 }
   0xb   :  { %p4938_p4 = pnand %p4937_p3, %p4931_p0 }
   0xd   :  { %4941 = shalt.err (!%p4938_p4)
}
   0xe   :  { %s5029_s24 = smov 128   ;;  %s5030_s25 = smov 8  }
   0xf   :  { %54 = dma.hbm_to_vmem [thread:$0]  %s6261_s4, 1024, %s49_s22, [#allocation7], %s5029_s24, %s5029_s24, %s5030_s25  }
  0x10   :  { %s5031_s28 = smov [#allocation9]   ;;  %s5032_s30 = smov [#allocation4]  }
  0x11   :  { %s72_s29 = sshll.u32 %s5031_s28, 4  ;;  %s32_s0 = sshll.u32 %s5032_s30, 4  ;;  %s73_s29 = int_to_ptr.vmem [resolvable:$true] %s72_s29  ;;  %s33_s0 = int_to_ptr.vmem [resolvable:$true] %s32_s0 }
  0x12   :  { %s4950_s17 = scalar_lea.vmem %s73_s29, 256  ;;  %p4955_p6 = scmp.lt.s32.totalorder %s73_s29, %s73_s29 }
  0x13   :  { %p4951_p5 = scmp.ne.s32.totalorder %s73_s29, %s4950_s17  ;;  %p4956_p7 = scmp.lt.s32.totalorder %s4950_s17, %s4950_s17 }
  0x15   :  { %p4957_p8 = por %p4956_p7, %p4955_p6 }
  0x17   :  { %p4958_p9 = pnand %p4957_p8, %p4951_p5 }
  0x19   :  { %4961 = shalt.err (!%p4958_p9)
}
  0x1a   :  { %s5033_s18 = smov 64   ;;  %s5034_s19 = smov 4  }
  0x1b   :  { %78 = dma.hbm_to_vmem [thread:$0]  %s6263_s6, 256, %s73_s29, [#allocation10], %s5033_s18, %s5033_s18, %s5034_s19  }
  0x1c   :  { %s4970_s4 = scalar_lea.vmem %s33_s0, 384  ;;  %p4975_p11 = scmp.lt.s32.totalorder %s33_s0, %s33_s0 }
  0x1d   :  { %p4971_p10 = scmp.ne.s32.totalorder %s33_s0, %s4970_s4  ;;  %p4976_p12 = scmp.lt.s32.totalorder %s4970_s4, %s4970_s4 }
  0x1f   :  { %p4977_p13 = por %p4976_p12, %p4975_p11 }
  0x21   :  { %p4978_p0 = pnand %p4977_p13, %p4971_p10 }
  0x23   :  { %4981 = shalt.err (!%p4978_p0)
}
  0x24   :  { %38 = dma.hbm_to_vmem [thread:$0]  %s6258_s1, 384, %s33_s0, [#allocation5], %s5033_s18, %s5033_s18, %s5034_s19  }
  0x25   :  { %s5035_s26 = smov [#allocation8]   ;;  %s5036_s28 = smov [#allocation11]  }
  0x26   :  { %s60_s27 = sshll.u32 %s5035_s26, 4  ;;  %s90_s30 = sshll.u32 %s5036_s28, 4  ;;  %s61_s27 = int_to_ptr.vmem [resolvable:$true] %s60_s27  ;;  %s91_s30 = int_to_ptr.vmem [resolvable:$true] %s90_s30 }
  0x27   :  { %s4990_s6 = scalar_lea.vmem %s61_s27, 512  ;;  %p4995_p2 = scmp.lt.s32.totalorder %s61_s27, %s61_s27 }
  0x28   :  { %p4991_p1 = scmp.ne.s32.totalorder %s61_s27, %s4990_s6  ;;  %p4996_p3 = scmp.lt.s32.totalorder %s4990_s6, %s4990_s6 }
  0x2a   :  { %p4997_p4 = por %p4996_p3, %p4995_p2 }
  0x2c   :  { %p4998_p5 = pnand %p4997_p4, %p4991_p1 }
  0x2e   :  { %5001 = shalt.err (!%p4998_p5)
}
  0x2f   :  { %66 = dma.hbm_to_vmem [thread:$0]  %s6262_s5, 512, %s61_s27, [#allocation7], %s5033_s18, %s5033_s18, %s5034_s19  }
  0x30   :  { %s5010_s1 = scalar_lea.vmem %s91_s30, 1024  ;;  %p5015_p7 = scmp.lt.s32.totalorder %s91_s30, %s91_s30 }
  0x31   :  { %p5011_p6 = scmp.ne.s32.totalorder %s91_s30, %s5010_s1  ;;  %p5016_p8 = scmp.lt.s32.totalorder %s5010_s1, %s5010_s1 }
  0x33   :  { %p5017_p9 = por %p5016_p8, %p5015_p7 }
  0x35   :  { %p5018_p10 = pnand %p5017_p9, %p5011_p6 }
  0x37   :  { %5021 = shalt.err (!%p5018_p10)
}
  0x38   :  { %96 = dma.hbm_to_vmem [thread:$0]  %s6267_s10, 1024, %s91_s30, [#allocation10], %s5029_s24, %s5029_s24, %s5030_s25  }
  0x39   :  { %5022 = dma.done.wait [#allocation5], 384  }
  0x3a   :  { %5023 = vsyncadd [#allocation5], 4294966912 }
  0x3b   :  { %5024 = dma.done.wait [#allocation7], 1536  }
  0x3c   :  { %5025 = vsyncadd [#allocation7], 4294965760 }
  0x3d   :  { %5026 = dma.done.wait [#allocation10], 1280  }
  0x3e   :  { %5027 = vsyncadd [#allocation10], 4294966016  ;;  %v4739_v0 = vld [vmem:[#allocation4 + $0x10] sm:$0xff]   ;;  %v4740_v1 = vld [vmem:[#allocation4 + $0x8] sm:$0xff]   ;;  %vm271_vm0 = vcmask 392192   ;;  %s6286_s21 = sld [smem:[#allocation23_spill]] }
  0x3f   :  { %4473 = vmatprep.subr.bf16.mxu0 %v4739_v0  ;;  %v4741_v3 = vld [vmem:[#allocation4] sm:$0xff]   ;;  %v5238_v39 = vld [vmem:[%s6259_s2 + $0x8] sm:$0xff]   ;;  %v5243_v41 = vld [vmem:[%s6259_s2 + $0x10] sm:$0xff]   ;;  %vm647_vm1 = vcmask 261120   ;;  %s5038_s22 = smov 32   ;;  %vm684_vm2 = vcmask 523264  }
  0x40   :  { %4474 = vmatpush3.bf16.msra.mxu0 %v4739_v0  ;;  %v5229_v21 = vld [vmem:[%s6259_s2] sm:$0xff]   ;;  %v5252_v47 = vld [vmem:[%s6259_s2 + $0x18] sm:$0xff]   ;;  %v5266_v54 = vld [vmem:[%s6259_s2 + $0x28] sm:$0xff]   ;;  %vm1086_vm3 = vcmask 1048064   ;;  %vm1049_vm4 = vcmask 523520   ;;  %vm1914_vm5 = vcmask 785408  }
  0x41   :  { %4475 = vmatprep.subr.bf16.mxu0 %v4740_v1  ;;  %4521 = vmatprep.mubr.msk.bf16.mxu1 %vm271_vm0, %v5229_v21  ;;  %v5257_v49 = vld [vmem:[%s6259_s2 + $0x20] sm:$0xff]   ;;  %s5037_s2 = smov 96   ;;  %vm5041_vm6 = vmmov 0   ;;  %vm2303_vm7 = vcmask 523268   ;;  %vm2314_vm8 = vcmask 7172  }
  0x44   :  { %v4742_v2 = vld [vmem:[%s6286_s21] sm:$0xff]   ;;  %4476 = vmatpush3.bf16.msra.mxu0 %v4740_v1  ;;  %v4743_v4 = vld [vmem:[%s6286_s21 + $0x8] sm:$0xff]   ;;  %v4744_v5 = vld [vmem:[%s6286_s21 + $0x10] sm:$0xff]  }
  0x45   :  { %4479 = vmatprep.mubr.msk.bf16.mxu0 %vm271_vm0, %v4742_v2  ;;  %4477 = vmatprep.subr.bf16.mxu0 %v4741_v3  ;;  %v4745_v6 = vld [vmem:[%s6286_s21 + $0x18] sm:$0xff]   ;;  %v4746_v7 = vld [vmem:[%s6286_s21 + $0x20] sm:$0xff]   ;;  %v4747_v8 = vld [vmem:[%s6286_s21 + $0x28] sm:$0xff]  }
  0x46   :  { %v4748_v9 = vld [vmem:[%s6286_s21 + $0x30] sm:$0xff]   ;;  %v4749_v10 = vld [vmem:[%s6286_s21 + $0x38] sm:$0xff]   ;;  %v4750_v11 = vld [vmem:[%s6286_s21 + $0x40] sm:$0xff]  }
  0x47   :  { %v4751_v12 = vld [vmem:[%s6286_s21 + $0x48] sm:$0xff]   ;;  %v4752_v13 = vld [vmem:[%s6286_s21 + $0x50] sm:$0xff]   ;;  %v4753_v14 = vld [vmem:[%s6286_s21 + $0x58] sm:$0xff]  }
  0x48   :  { %4478 = vmatpush3.bf16.msra.mxu0 %v4741_v3  ;;  %v4754_v15 = vld [vmem:[%s6286_s21 + $0x60] sm:$0xff]   ;;  %v4755_v16 = vld [vmem:[%s6286_s21 + $0x68] sm:$0xff]   ;;  %v4756_v17 = vld [vmem:[%s6286_s21 + $0x70] sm:$0xff]  }
  0x49   :  { %v4757_v18 = vld [vmem:[%s6286_s21 + $0x78] sm:$0xff]   ;;  %v4758_v19 = vld [vmem:[%s6286_s21 + $0x80] sm:$0xff]   ;;  %v4759_v20 = vld [vmem:[%s6286_s21 + $0x88] sm:$0xff]  }
  0x4b   :  { %4480 = vmatmul.mubr.msk.bf16.vlgmr.msra.gmra.mxu0 %vm271_vm0, %v4743_v4 }
  0x4c   :  { %4483 = vmatprep.mubr.msk.bf16.mxu0 %vm271_vm0, %v4744_v5 }
  0x53   :  { %4484 = vmatmul.mubr.msk.bf16.gmra.mxu0 %vm271_vm0, %v4745_v6 }
  0x54   :  { %4487 = vmatprep.mubr.msk.bf16.mxu0 %vm271_vm0, %v4746_v7 }
  0x5b   :  { %4488 = vmatmul.mubr.msk.bf16.gmra.mxu0 %vm271_vm0, %v4747_v8 }
  0x5c   :  { %4491 = vmatprep.mubr.msk.bf16.mxu0 %vm271_vm0, %v4748_v9 }
  0x63   :  { %4492 = vmatmul.mubr.msk.bf16.gmra.mxu0 %vm271_vm0, %v4749_v10 }
  0x64   :  { %4495 = vmatprep.mubr.msk.bf16.mxu0 %vm271_vm0, %v4750_v11 }
  0x6b   :  { %4496 = vmatmul.mubr.msk.bf16.gmra.mxu0 %vm271_vm0, %v4751_v12 }
  0x6c   :  { %4499 = vmatprep.mubr.msk.bf16.mxu0 %vm271_vm0, %v4752_v13 }
  0x73   :  { %4500 = vmatmul.mubr.msk.bf16.gmra.mxu0 %vm271_vm0, %v4753_v14 }
  0x74   :  { %4503 = vmatprep.mubr.msk.bf16.mxu0 %vm271_vm0, %v4754_v15 }
  0x7b   :  { %4504 = vmatmul.mubr.msk.bf16.gmra.mxu0 %vm271_vm0, %v4755_v16 }
  0x7c   :  { %4507 = vmatprep.mubr.msk.bf16.mxu0 %vm271_vm0, %v4756_v17 }
  0x83   :  { %4508 = vmatmul.mubr.msk.bf16.gmra.mxu0 %vm271_vm0, %v4757_v18 }
  0x84   :  { %4511 = vmatprep.mubr.msk.bf16.mxu0 %vm271_vm0, %v4758_v19 }
  0x8b   :  { %4512 = vmatmul.mubr.msk.bf16.gmra.mxu0 %vm271_vm0, %v4759_v20 }
  0x8c   :  { %4575 = vmatprep.mubr.msk.bf16.mxu0 %vm271_vm0, %v5229_v21 }
 0x10b   :  { %v4481_v22 = vpop.f32.mrf.mxu0 }
 0x10d   :  { %v360_v23 = vpop.f32.mrf.mxu0 }
 0x10f   :  { %v4482_v24 = vpop.f32.mrf.mxu0 }
 0x110   :  { %v516_v32 = vpack.c.bf16 %v4482_v24, %v4481_v22 }
 0x111   :  { %v363_v25 = vpop.f32.mrf.mxu0 }
 0x112   :  { %v515_v35 = vpack.c.bf16 %v363_v25, %v360_v23  ;;  %v4766_v25 = vld [vmem:[%s6260_s3 + $0x38] sm:$0xff]  }
 0x113   :  { %v4485_v26 = vpop.f32.mrf.mxu0 }
 0x115   :  { %v376_v27 = vpop.f32.mrf.mxu0 }
 0x117   :  { %v4486_v28 = vpop.f32.mrf.mxu0 }
 0x118   :  { %v693_v46 = vpack.c.bf16 %v4486_v28, %v4485_v26  ;;  %v4767_v28 = vld [vmem:[%s6260_s3 + $0x30] sm:$0xff]  }
 0x119   :  { %v379_v29 = vpop.f32.mrf.mxu0 }
 0x11a   :  { %v517_v30 = vpack.c.bf16 %v379_v29, %v376_v27 }
 0x11b   :  { %v4489_v31 = vpop.f32.mrf.mxu0 }
 0x11c   :  { %4515 = vmatprep.subr.bf16.mxu1 %v517_v30 }
 0x11d   :  { %v392_v33 = vpop.f32.mrf.mxu0  ;;  %4516 = vmatpush3.bf16.msra.mxu1 %v517_v30 }
 0x11e   :  { %4517 = vmatprep.subr.bf16.mxu1 %v516_v32 }
 0x11f   :  { %v4490_v34 = vpop.f32.mrf.mxu0 }
 0x120   :  { %v695_v38 = vpack.c.bf16 %v4490_v34, %v4489_v31  ;;  %v4768_v31 = vld [vmem:[%s6260_s3 + $0x28] sm:$0xff]   ;;  %v4769_v34 = vld [vmem:[%s6260_s3 + $0x20] sm:$0xff]  }
 0x121   :  { %v395_v36 = vpop.f32.mrf.mxu0  ;;  %4518 = vmatpush3.bf16.msra.mxu1 %v516_v32 }
 0x122   :  { %4519 = vmatprep.subr.bf16.mxu1 %v515_v35  ;;  %v694_v43 = vpack.c.bf16 %v395_v36, %v392_v33 }
 0x123   :  { %v4493_v37 = vpop.f32.mrf.mxu0 }
 0x125   :  { %v408_v40 = vpop.f32.mrf.mxu0  ;;  %4520 = vmatpush3.bf16.msra.mxu1 %v515_v35 }
 0x126   :  { %4533 = vmatprep.subr.bf16.mxu1 %v695_v38 }
 0x127   :  { %v4494_v42 = vpop.f32.mrf.mxu0 }
 0x128   :  { %4522 = vmatmul.mubr.msk.bf16.vlgmr.msra.gmra.mxu1 %vm271_vm0, %v5238_v39  ;;  %v822_v0 = vpack.c.bf16 %v4494_v42, %v4493_v37 }
 0x129   :  { %v411_v44 = vpop.f32.mrf.mxu0  ;;  %4534 = vmatpush3.bf16.msra.mxu1 %v695_v38  ;;  %4525 = vmatprep.mubr.msk.bf16.mxu1 %vm271_vm0, %v5243_v41  ;;  %v4770_v38 = vld [vmem:[%s6260_s3 + $0x18] sm:$0xff]  }
 0x12a   :  { %4535 = vmatprep.subr.bf16.mxu1 %v694_v43  ;;  %v821_v3 = vpack.c.bf16 %v411_v44, %v408_v40 }
 0x12b   :  { %v4497_v45 = vpop.f32.mrf.mxu0 }
 0x12d   :  { %v424_v48 = vpop.f32.mrf.mxu0  ;;  %4536 = vmatpush3.bf16.msra.mxu1 %v694_v43  ;;  %v4771_v43 = vld [vmem:[%s6260_s3 + $0x10] sm:$0xff]  }
 0x12e   :  { %4537 = vmatprep.subr.bf16.mxu1 %v693_v46 }
 0x12f   :  { %v4498_v50 = vpop.f32.mrf.mxu0 }
 0x130   :  { %4526 = vmatmul.mubr.msk.bf16.gmra.mxu1 %vm271_vm0, %v5252_v47  ;;  %v949_v62 = vpack.c.bf16 %v4498_v50, %v4497_v45 }
 0x131   :  { %v427_v51 = vpop.f32.mrf.mxu0  ;;  %4538 = vmatpush3.bf16.msra.mxu1 %v693_v46  ;;  %4529 = vmatprep.mubr.msk.bf16.mxu1 %vm271_vm0, %v5257_v49 }
 0x132   :  { %v823_v52 = vpack.c.bf16 %v427_v51, %v424_v48  ;;  %v4772_v48 = vld [vmem:[%s6260_s3 + $0x8] sm:$0xff]  }
 0x133   :  { %v4501_v53 = vpop.f32.mrf.mxu0 }
 0x134   :  { %4551 = vmatprep.subr.bf16.mxu1 %v823_v52 }
 0x135   :  { %v440_v55 = vpop.f32.mrf.mxu0 }
 0x137   :  { %v4502_v56 = vpop.f32.mrf.mxu0 }
 0x138   :  { %v951_v57 = vpack.c.bf16 %v4502_v56, %v4501_v53  ;;  %4530 = vmatmul.mubr.msk.bf16.gmra.mxu1 %vm271_vm0, %v5266_v54  ;;  %v4773_v53 = vld [vmem:[%s6260_s3] sm:$0xff]  }
 0x139   :  { %v443_v58 = vpop.f32.mrf.mxu0  ;;  %4539 = vmatprep.mubr.msk.bf16.mxu1 %vm271_vm0, %v5229_v21 }
 0x13a   :  { %v950_v59 = vpack.c.bf16 %v443_v58, %v440_v55  ;;  %4569 = vmatprep.subr.bf16.mxu0 %v951_v57 }
 0x13b   :  { %4570 = vmatpush3.bf16.msra.mxu0 %v951_v57  ;;  %v4505_v60 = vpop.f32.mrf.mxu0 }
 0x13c   :  { %4571 = vmatprep.subr.bf16.mxu0 %v950_v59 }
 0x13d   :  { %v456_v61 = vpop.f32.mrf.mxu0 }
 0x13f   :  { %4572 = vmatpush3.bf16.msra.mxu0 %v950_v59  ;;  %v4506_v63 = vpop.f32.mrf.mxu0 }
 0x140   :  { %4540 = vmatmul.mubr.msk.bf16.vlgmr.msra.gmra.mxu1 %vm271_vm0, %v5238_v39  ;;  %4573 = vmatprep.subr.bf16.mxu0 %v949_v62  ;;  %v1096_v15 = vpack.c.bf16 %v4506_v63, %v4505_v60 }
 0x141   :  { %4552 = vmatpush3.bf16.msra.mxu1 %v823_v52  ;;  %4543 = vmatprep.mubr.msk.bf16.mxu1 %vm271_vm0, %v5243_v41  ;;  %v459_v1 = vpop.f32.mrf.mxu0 }
 0x142   :  { %4553 = vmatprep.subr.bf16.mxu1 %v822_v0  ;;  %v1095_v16 = vpack.c.bf16 %v459_v1, %v456_v61 }
 0x143   :  { %4574 = vmatpush3.bf16.msra.mxu0 %v949_v62  ;;  %v4509_v2 = vpop.f32.mrf.mxu0 }
 0x145   :  { %4554 = vmatpush3.bf16.msra.mxu1 %v822_v0  ;;  %v472_v4 = vpop.f32.mrf.mxu0 }
 0x146   :  { %4555 = vmatprep.subr.bf16.mxu1 %v821_v3  ;;  %4576 = vmatmul.mubr.msk.bf16.vlgmr.msra.gmra.mxu0 %vm271_vm0, %v5238_v39 }
 0x147   :  { %v4510_v5 = vpop.f32.mrf.mxu0  ;;  %4579 = vmatprep.mubr.msk.bf16.mxu0 %vm271_vm0, %v5243_v41 }
 0x148   :  { %4544 = vmatmul.mubr.msk.bf16.gmra.mxu1 %vm271_vm0, %v5252_v47  ;;  %v1239_v14 = vpack.c.bf16 %v4510_v5, %v4509_v2 }
 0x149   :  { %4556 = vmatpush3.bf16.msra.mxu1 %v821_v3  ;;  %4547 = vmatprep.mubr.msk.bf16.mxu1 %vm271_vm0, %v5257_v49  ;;  %v475_v6 = vpop.f32.mrf.mxu0 }
 0x14a   :  { %v1097_v7 = vpack.c.bf16 %v475_v6, %v472_v4 }
 0x14b   :  { %v4513_v8 = vpop.f32.mrf.mxu0 }
 0x14c   :  { %4587 = vmatprep.subr.bf16.mxu1 %v1097_v7 }
 0x14d   :  { %v488_v9 = vpop.f32.mrf.mxu0 }
 0x14e   :  { %4580 = vmatmul.mubr.msk.bf16.gmra.mxu0 %vm271_vm0, %v5252_v47 }
 0x14f   :  { %v4514_v10 = vpop.f32.mrf.mxu0  ;;  %4583 = vmatprep.mubr.msk.bf16.mxu0 %vm271_vm0, %v5257_v49 }
 0x150   :  { %4548 = vmatmul.mubr.msk.bf16.gmra.mxu1 %vm271_vm0, %v5266_v54  ;;  %v1241_v11 = vpack.c.bf16 %v4514_v10, %v4513_v8 }
 0x151   :  { %4557 = vmatprep.mubr.msk.bf16.mxu1 %vm271_vm0, %v5229_v21  ;;  %v491_v12 = vpop.f32.mrf.mxu0 }
 0x152   :  { %4605 = vmatprep.subr.bf16.mxu0 %v1241_v11  ;;  %v1240_v13 = vpack.c.bf16 %v491_v12, %v488_v9 }
 0x153   :  { %4606 = vmatpush3.bf16.msra.mxu0 %v1241_v11 }
 0x154   :  { %4607 = vmatprep.subr.bf16.mxu0 %v1240_v13 }
 0x156   :  { %4584 = vmatmul.mubr.msk.bf16.gmra.mxu0 %vm271_vm0, %v5266_v54 }
 0x157   :  { %4608 = vmatpush3.bf16.msra.mxu0 %v1240_v13  ;;  %4611 = vmatprep.mubr.msk.bf16.mxu0 %vm271_vm0, %v5229_v21 }
 0x158   :  { %4558 = vmatmul.mubr.msk.bf16.vlgmr.msra.gmra.mxu1 %vm271_vm0, %v5238_v39  ;;  %4609 = vmatprep.subr.bf16.mxu0 %v1239_v14 }
 0x159   :  { %4561 = vmatprep.mubr.msk.bf16.mxu1 %vm271_vm0, %v5243_v41  ;;  %4588 = vmatpush3.bf16.msra.mxu1 %v1097_v7 }
 0x15a   :  { %4589 = vmatprep.subr.bf16.mxu1 %v1096_v15 }
 0x15b   :  { %4610 = vmatpush3.bf16.msra.mxu0 %v1239_v14 }
 0x15d   :  { %4590 = vmatpush3.bf16.msra.mxu1 %v1096_v15 }
 0x15e   :  { %4612 = vmatmul.mubr.msk.bf16.vlgmr.msra.gmra.mxu0 %vm271_vm0, %v5238_v39  ;;  %4591 = vmatprep.subr.bf16.mxu1 %v1095_v16 }
 0x15f   :  { %4615 = vmatprep.mubr.msk.bf16.mxu0 %vm271_vm0, %v5243_v41 }
 0x160   :  { %4562 = vmatmul.mubr.msk.bf16.gmra.mxu1 %vm271_vm0, %v5252_v47 }
 0x161   :  { %4565 = vmatprep.mubr.msk.bf16.mxu1 %vm271_vm0, %v5257_v49  ;;  %4592 = vmatpush3.bf16.msra.mxu1 %v1095_v16 }
 0x162   :  { %4623 = vmatprep.subr.bf16.mxu1 %v4766_v25 }
 0x166   :  { %4616 = vmatmul.mubr.msk.bf16.gmra.mxu0 %vm271_vm0, %v5252_v47 }
 0x167   :  { %4619 = vmatprep.mubr.msk.bf16.mxu0 %vm271_vm0, %v5257_v49 }
 0x168   :  { %4566 = vmatmul.mubr.msk.bf16.gmra.mxu1 %vm271_vm0, %v5266_v54 }
 0x169   :  { %4593 = vmatprep.mubr.msk.bf16.mxu1 %vm271_vm0, %v5229_v21 }
 0x16e   :  { %4620 = vmatmul.mubr.msk.bf16.gmra.mxu0 %vm271_vm0, %v5266_v54 }
 0x170   :  { %4594 = vmatmul.mubr.msk.bf16.vlgmr.msra.gmra.mxu1 %vm271_vm0, %v5238_v39 }
 0x171   :  { %4597 = vmatprep.mubr.msk.bf16.mxu1 %vm271_vm0, %v5243_v41  ;;  %4624 = vmatpush3.bf16.msra.mxu1 %v4766_v25 }
 0x172   :  { %4625 = vmatprep.subr.bf16.mxu1 %v4767_v28 }
 0x175   :  { %4626 = vmatpush3.bf16.msra.mxu1 %v4767_v28 }
 0x176   :  { %4627 = vmatprep.subr.bf16.mxu1 %v4768_v31 }
 0x178   :  { %4598 = vmatmul.mubr.msk.bf16.gmra.mxu1 %vm271_vm0, %v5252_v47 }
 0x179   :  { %4601 = vmatprep.mubr.msk.bf16.mxu1 %vm271_vm0, %v5257_v49  ;;  %4628 = vmatpush3.bf16.msra.mxu1 %v4768_v31  ;;  %v5421_v31 = vld [vmem:[#allocation8 + $0x18] sm:$0xff]  }
 0x17a   :  { %4629 = vmatprep.subr.bf16.mxu1 %v4769_v34 }
 0x17d   :  { %4630 = vmatpush3.bf16.msra.mxu1 %v4769_v34 }
 0x17e   :  { %4631 = vmatprep.subr.bf16.mxu1 %v4770_v38 }
 0x180   :  { %4602 = vmatmul.mubr.msk.bf16.gmra.mxu1 %vm271_vm0, %v5266_v54 }
 0x181   :  { %4632 = vmatpush3.bf16.msra.mxu1 %v4770_v38 }
 0x182   :  { %4633 = vmatprep.subr.bf16.mxu1 %v4771_v43 }
 0x185   :  { %4634 = vmatpush3.bf16.msra.mxu1 %v4771_v43 }
 0x186   :  { %4635 = vmatprep.subr.bf16.mxu1 %v4772_v48 }
 0x189   :  { %4636 = vmatpush3.bf16.msra.mxu1 %v4772_v48 }
 0x18a   :  { %4637 = vmatprep.subr.bf16.mxu1 %v4773_v53 }
 0x18d   :  { %4638 = vmatpush3.bf16.msra.mxu1 %v4773_v53 }
 0x18e   :  { %4663 = vmatprep.subr.bf16.mxu1 %v5421_v31 }
 0x1e8   :  { %v4523_v17 = vpop.f32.mrf.mxu1 }
 0x1e9   :  { %650 = vst.msk [vmem:[#allocation3 + $0x10] sm:$0xff] %vm647_vm1, %v4523_v17 }
 0x1ea   :  { %v600_v18 = vpop.f32.mrf.mxu1 }
 0x1eb   :  { %648 = vst.msk [vmem:[#allocation3] sm:$0xff] %vm647_vm1, %v600_v18 }
 0x1ec   :  { %v4524_v19 = vpop.f32.mrf.mxu1 }
 0x1ed   :  { %651 = vst.msk [vmem:[#allocation3 + $0x18] sm:$0xff] %vm647_vm1, %v4524_v19 }
 0x1ee   :  { %v603_v20 = vpop.f32.mrf.mxu1 }
 0x1ef   :  { %649 = vst.msk [vmem:[#allocation3 + $0x8] sm:$0xff] %vm647_vm1, %v603_v20 }
 0x1f0   :  { %v4527_v21 = vpop.f32.mrf.mxu1 }
 0x1f1   :  { %664 = vrot.lane.b32.xlu1 %v4527_v21, %s5037_s2 }
 0x1f2   :  { %v616_v22 = vpop.f32.mrf.mxu1 }
 0x1f3   :  { %660 = vrot.lane.b32.xlu0 %v616_v22, %s5037_s2 }
 0x1f4   :  { %v4528_v23 = vpop.f32.mrf.mxu1 }
 0x1f5   :  { %666 = vrot.lane.b32.xlu1 %v4528_v23, %s5037_s2 }
 0x1f6   :  { %v619_v24 = vpop.f32.mrf.mxu1 }
 0x1f7   :  { %662 = vrot.lane.b32.xlu0 %v619_v24, %s5037_s2 }
 0x1f8   :  { %v4531_v26 = vpop.f32.mrf.mxu1 }
 0x1fa   :  { %v632_v27 = vpop.f32.mrf.mxu1 }
 0x1fb   :  { %672 = vrot.lane.b32.xlu0 %v4531_v26, %s5037_s2 }
 0x1fc   :  { %v4532_v29 = vpop.f32.mrf.mxu1 }
 0x1fd   :  { %674 = vrot.lane.b32.xlu1 %v4532_v29, %s5037_s2 }
 0x1fe   :  { %v635_v30 = vpop.f32.mrf.mxu1 }
 0x1ff   :  { %668 = vrot.lane.b32.xlu0 %v632_v27, %s5037_s2 }
 0x200   :  { %v4541_v32 = vpop.f32.mrf.mxu1 }
 0x201   :  { %779 = vst.msk [vmem:[#allocation3 + $0x30] sm:$0xff] %vm647_vm1, %v4541_v32  ;;  %670 = vrot.lane.b32.xlu1 %v635_v30, %s5037_s2 }
 0x202   :  { %v730_v33 = vpop.f32.mrf.mxu1 }
 0x203   :  { %777 = vst.msk [vmem:[#allocation3 + $0x20] sm:$0xff] %vm647_vm1, %v730_v33 }
 0x204   :  { %v4542_v35 = vpop.f32.mrf.mxu1 }
 0x205   :  { %780 = vst.msk [vmem:[#allocation3 + $0x38] sm:$0xff] %vm647_vm1, %v4542_v35 }
 0x206   :  { %v733_v36 = vpop.f32.mrf.mxu1  ;;  %v5355_v37 = vpop.f32.mrf.mxu0 }
 0x207   :  { %778 = vst.msk [vmem:[#allocation3 + $0x28] sm:$0xff] %vm647_vm1, %v733_v36 }
 0x208   :  { %v4545_v39 = vpop.f32.mrf.mxu1  ;;  %v5361_v40 = vpop.f32.mrf.mxu0 }
 0x209   :  { %793 = vrot.lane.b32.xlu0 %v4545_v39, %s5037_s2 }
 0x20a   :  { %v746_v41 = vpop.f32.mrf.mxu1  ;;  %v5364_v42 = vpop.f32.mrf.mxu0 }
 0x20c   :  { %v4546_v44 = vpop.f32.mrf.mxu1  ;;  %v5369_v45 = vpop.f32.mrf.mxu0 }
 0x20d   :  { %789 = vrot.lane.b32.xlu0 %v746_v41, %s5037_s2  ;;  %795 = vrot.lane.b32.xlu1 %v4546_v44, %s5037_s2 }
 0x20e   :  { %v749_v46 = vpop.f32.mrf.mxu1  ;;  %v4581_v47 = vpop.f32.mrf.mxu0 }
 0x210   :  { %v4549_v49 = vpop.f32.mrf.mxu1  ;;  %v1002_v50 = vpop.f32.mrf.mxu0 }
 0x211   :  { %791 = vrot.lane.b32.xlu1 %v749_v46, %s5037_s2  ;;  %1066 = vrot.lane.b32.xlu0 %v4581_v47, %s5038_s22 }
 0x212   :  { %v762_v51 = vpop.f32.mrf.mxu1  ;;  %v4582_v52 = vpop.f32.mrf.mxu0 }
 0x214   :  { %v4550_v54 = vpop.f32.mrf.mxu1  ;;  %v1005_v55 = vpop.f32.mrf.mxu0 }
 0x215   :  { %1062 = vrot.lane.b32.xlu0 %v1002_v50, %s5038_s22  ;;  %1068 = vrot.lane.b32.xlu1 %v4582_v52, %s5038_s22 }
 0x216   :  { %v765_v56 = vpop.f32.mrf.mxu1  ;;  %v4585_v57 = vpop.f32.mrf.mxu0 }
 0x218   :  { %v4559_v58 = vpop.f32.mrf.mxu1  ;;  %v1018_v59 = vpop.f32.mrf.mxu0 }
 0x219   :  { %907 = vst.msk [vmem:[#allocation3 + $0x50] sm:$0xff] %vm647_vm1, %v4559_v58  ;;  %801 = vrot.lane.b32.xlu0 %v4549_v49, %s5037_s2  ;;  %1064 = vrot.lane.b32.xlu1 %v1005_v55, %s5038_s22 }
 0x21a   :  { %v858_v60 = vpop.f32.mrf.mxu1  ;;  %v4586_v61 = vpop.f32.mrf.mxu0 }
 0x21b   :  { %905 = vst.msk [vmem:[#allocation3 + $0x40] sm:$0xff] %vm647_vm1, %v858_v60 }
 0x21c   :  { %v4560_v62 = vpop.f32.mrf.mxu1  ;;  %v1021_v63 = vpop.f32.mrf.mxu0 }
 0x21d   :  { %908 = vst.msk [vmem:[#allocation3 + $0x58] sm:$0xff] %vm647_vm1, %v4560_v62  ;;  %797 = vrot.lane.b32.xlu0 %v762_v51, %s5037_s2  ;;  %803 = vrot.lane.b32.xlu1 %v4550_v54, %s5037_s2 }
 0x21e   :  { %v861_v0 = vpop.f32.mrf.mxu1  ;;  %v5390_v1 = vpop.f32.mrf.mxu0 }
 0x21f   :  { %906 = vst.msk [vmem:[#allocation3 + $0x48] sm:$0xff] %vm647_vm1, %v861_v0  ;;  %v4776_v0 = vld [vmem:[#allocation8 + $0x8] sm:$0xff]  }
 0x220   :  { %v4563_v2 = vpop.f32.mrf.mxu1  ;;  %v5393_v3 = vpop.f32.mrf.mxu0 }
 0x221   :  { %799 = vrot.lane.b32.xlu1 %v765_v56, %s5037_s2  ;;  %1074 = vrot.lane.b32.xlu0 %v4585_v57, %s5038_s22 }
 0x222   :  { %v874_v4 = vpop.f32.mrf.mxu1  ;;  %v5397_v5 = vpop.f32.mrf.mxu0 }
 0x224   :  { %v4564_v6 = vpop.f32.mrf.mxu1  ;;  %v5399_v7 = vpop.f32.mrf.mxu0 }
 0x225   :  { %1070 = vrot.lane.b32.xlu0 %v1018_v59, %s5038_s22  ;;  %1076 = vrot.lane.b32.xlu1 %v4586_v61, %s5038_s22  ;;  %v4775_v61 = vld [vmem:[#allocation8 + $0x10] sm:$0xff]  }
 0x226   :  { %v877_v8 = vpop.f32.mrf.mxu1  ;;  %v4617_v10 = vpop.f32.mrf.mxu0 }
 0x228   :  { %v4567_v9 = vpop.f32.mrf.mxu1  ;;  %v1292_v13 = vpop.f32.mrf.mxu0 }
 0x229   :  { %921 = vrot.lane.b32.xlu0 %v4563_v2, %s5037_s2  ;;  %1072 = vrot.lane.b32.xlu1 %v1021_v63, %s5038_s22 }
 0x22a   :  { %v890_v11 = vpop.f32.mrf.mxu1  ;;  %v4618_v16 = vpop.f32.mrf.mxu0 }
 0x22c   :  { %v4568_v12 = vpop.f32.mrf.mxu1  ;;  %v1295_v19 = vpop.f32.mrf.mxu0 }
 0x22d   :  { %917 = vrot.lane.b32.xlu0 %v874_v4, %s5037_s2  ;;  %923 = vrot.lane.b32.xlu1 %v4564_v6, %s5037_s2 }
 0x22e   :  { %v893_v14 = vpop.f32.mrf.mxu1  ;;  %v4621_v29 = vpop.f32.mrf.mxu0 }
 0x230   :  { %v4595_v15 = vpop.f32.mrf.mxu1  ;;  %v1308_v30 = vpop.f32.mrf.mxu0 }
 0x231   :  { %919 = vrot.lane.b32.xlu1 %v877_v8, %s5037_s2  ;;  %1351 = vrot.lane.b32.xlu0 %v1292_v13, %s5038_s22 }
 0x232   :  { %v1132_v17 = vpop.f32.mrf.mxu1  ;;  %v4622_v32 = vpop.f32.mrf.mxu0 }
 0x234   :  { %v4596_v18 = vpop.f32.mrf.mxu1  ;;  %v1311_v33 = vpop.f32.mrf.mxu0 }
 0x235   :  { %1353 = vrot.lane.b32.xlu1 %v1295_v19, %s5038_s22 }
 0x236   :  { %v1135_v20 = vpop.f32.mrf.mxu1 }
 0x238   :  { %v4599_v21 = vpop.f32.mrf.mxu1 }
 0x239   :  { %1211 = vrot.lane.b32.xlu0 %v4599_v21, %s5038_s22 }
 0x23a   :  { %v1148_v22 = vpop.f32.mrf.mxu1 }
 0x23c   :  { %v4600_v23 = vpop.f32.mrf.mxu1 }
 0x23d   :  { %1207 = vrot.lane.b32.xlu0 %v1148_v22, %s5038_s22  ;;  %1213 = vrot.lane.b32.xlu1 %v4600_v23, %s5038_s22 }
 0x23e   :  { %v1151_v24 = vpop.f32.mrf.mxu1 }
 0x240   :  { %v4603_v25 = vpop.f32.mrf.mxu1 }
 0x241   :  { %1219 = vrot.lane.b32.xlu0 %v4603_v25, %s5038_s22  ;;  %1209 = vrot.lane.b32.xlu1 %v1151_v24, %s5038_s22 }
 0x242   :  { %v1164_v26 = vpop.f32.mrf.mxu1 }
 0x244   :  { %v4604_v27 = vpop.f32.mrf.mxu1 }
 0x245   :  { %1215 = vrot.lane.b32.xlu0 %v1164_v26, %s5038_s22  ;;  %1221 = vrot.lane.b32.xlu1 %v4604_v27, %s5038_s22 }
 0x246   :  { %v1167_v28 = vpop.f32.mrf.mxu1 }
 0x249   :  { %1355 = vrot.lane.b32.xlu0 %v4617_v10, %s5038_s22  ;;  %1217 = vrot.lane.b32.xlu1 %v1167_v28, %s5038_s22 }
 0x24d   :  { %925 = vrot.lane.b32.xlu0 %v890_v11, %s5037_s2  ;;  %1357 = vrot.lane.b32.xlu1 %v4618_v16, %s5038_s22 }
 0x251   :  { %929 = vrot.lane.b32.xlu0 %v4567_v9, %s5037_s2  ;;  %927 = vrot.lane.b32.xlu1 %v893_v14, %s5037_s2 }
 0x255   :  { %931 = vrot.lane.b32.xlu1 %v4568_v12, %s5037_s2  ;;  %1359 = vrot.lane.b32.xlu0 %v1308_v30, %s5038_s22 }
 0x259   :  { %1363 = vrot.lane.b32.xlu0 %v4621_v29, %s5038_s22  ;;  %1361 = vrot.lane.b32.xlu1 %v1311_v33, %s5038_s22 }
 0x25d   :  { %1037 = vrot.lane.b32.xlu0 %v5361_v40, %s5038_s22  ;;  %1365 = vrot.lane.b32.xlu1 %v4622_v32, %s5038_s22 }
 0x261   :  { %1041 = vrot.lane.b32.xlu0 %v5355_v37, %s5038_s22  ;;  %1039 = vrot.lane.b32.xlu1 %v5369_v45, %s5038_s22 }
 0x263   :  { %v665_v34 = vpop.permute.xlu1 %664 }
 0x264   :  { %687 = vst.msk [vmem:[#allocation2 + $0x10] sm:$0xff] %vm684_vm2, %v665_v34 }
 0x265   :  { %1183 = vrot.lane.b32.xlu0 %v1132_v17, %s5038_s22  ;;  %1043 = vrot.lane.b32.xlu1 %v5364_v42, %s5038_s22  ;;  %v661_v35 = vpop.permute.xlu0 %660 }
 0x266   :  { %685 = vst.msk [vmem:[#allocation2] sm:$0xff] %vm684_vm2, %v661_v35 }
 0x267   :  { %v667_v36 = vpop.permute.xlu1 %666 }
 0x268   :  { %688 = vst.msk [vmem:[#allocation2 + $0x18] sm:$0xff] %vm684_vm2, %v667_v36 }
 0x269   :  { %1187 = vrot.lane.b32.xlu0 %v4595_v15, %s5038_s22  ;;  %1185 = vrot.lane.b32.xlu1 %v1135_v20, %s5038_s22  ;;  %v663_v37 = vpop.permute.xlu0 %662 }
 0x26a   :  { %686 = vst.msk [vmem:[#allocation2 + $0x8] sm:$0xff] %vm684_vm2, %v663_v37 }
 0x26d   :  { %1327 = vrot.lane.b32.xlu0 %v5393_v3, %s5038_s22  ;;  %1189 = vrot.lane.b32.xlu1 %v4596_v18, %s5038_s22  ;;  %v673_v38 = vpop.permute.xlu0 %672  ;;  %v4777_v3 = vld [vmem:[#allocation8] sm:$0xff]  }
 0x26e   :  { %691 = vst.msk [vmem:[#allocation2 + $0x30] sm:$0xff] %vm684_vm2, %v673_v38 }
 0x26f   :  { %v675_v39 = vpop.permute.xlu1 %674 }
 0x270   :  { %692 = vst.msk [vmem:[#allocation2 + $0x38] sm:$0xff] %vm684_vm2, %v675_v39 }
 0x271   :  { %1331 = vrot.lane.b32.xlu0 %v5390_v1, %s5038_s22  ;;  %1329 = vrot.lane.b32.xlu1 %v5399_v7, %s5038_s22  ;;  %v669_v40 = vpop.permute.xlu0 %668 }
 0x272   :  { %689 = vst.msk [vmem:[#allocation2 + $0x20] sm:$0xff] %vm684_vm2, %v669_v40 }
 0x273   :  { %v671_v41 = vpop.permute.xlu1 %670 }
 0x274   :  { %690 = vst.msk [vmem:[#allocation2 + $0x28] sm:$0xff] %vm684_vm2, %v671_v41 }
 0x275   :  { %1333 = vrot.lane.b32.xlu1 %v5397_v5, %s5038_s22 }
 0x27b   :  { %v794_v42 = vpop.permute.xlu0 %793 }
 0x27c   :  { %815 = vst.msk [vmem:[#allocation2 + $0x50] sm:$0xff] %vm684_vm2, %v794_v42 }
 0x27f   :  { %v790_v43 = vpop.permute.xlu0 %789  ;;  %v796_v44 = vpop.permute.xlu1 %795 }
 0x280   :  { %813 = vst.msk [vmem:[#allocation2 + $0x40] sm:$0xff] %vm684_vm2, %v790_v43  ;;  %816 = vst.msk [vmem:[#allocation2 + $0x58] sm:$0xff] %vm684_vm2, %v796_v44 }
 0x283   :  { %v792_v45 = vpop.permute.xlu1 %791  ;;  %v1067_v46 = vpop.permute.xlu0 %1066 }
 0x284   :  { %814 = vst.msk [vmem:[#allocation2 + $0x48] sm:$0xff] %vm684_vm2, %v792_v45 }
 0x285   :  { %1089 = vst.msk [vmem:[#allocation2 + $0x10] sm:$0xff] %vm1086_vm3, %v1067_v46 }
 0x287   :  { %v1063_v47 = vpop.permute.xlu0 %1062  ;;  %v1069_v48 = vpop.permute.xlu1 %1068 }
 0x288   :  { %1087 = vst.msk [vmem:[#allocation2] sm:$0xff] %vm1086_vm3, %v1063_v47  ;;  %1090 = vst.msk [vmem:[#allocation2 + $0x18] sm:$0xff] %vm1086_vm3, %v1069_v48 }
 0x28b   :  { %v802_v49 = vpop.permute.xlu0 %801  ;;  %v1065_v50 = vpop.permute.xlu1 %1064 }
 0x28c   :  { %819 = vst.msk [vmem:[#allocation2 + $0x70] sm:$0xff] %vm684_vm2, %v802_v49  ;;  %v1385_v53 = vld [vmem:[#allocation2 + $0x10] sm:$0xff] }
 0x28d   :  { %1088 = vst.msk [vmem:[#allocation2 + $0x8] sm:$0xff] %vm1086_vm3, %v1065_v50 }
 0x28f   :  { %v798_v51 = vpop.permute.xlu0 %797  ;;  %v804_v52 = vpop.permute.xlu1 %803  ;;  %v1386_v54 = vld [vmem:[#allocation2 + $0x18] sm:$0xff]  ;;  %v1383_v57 = vld [vmem:[#allocation2] sm:$0xff] }
 0x290   :  { %817 = vst.msk [vmem:[#allocation2 + $0x60] sm:$0xff] %vm684_vm2, %v798_v51  ;;  %820 = vst.msk [vmem:[#allocation2 + $0x78] sm:$0xff] %vm684_vm2, %v804_v52  ;;  %v1408_v60 = vpack.c.bf16 %v1386_v54, %v1385_v53 }
 0x293   :  { %v800_v55 = vpop.permute.xlu1 %799  ;;  %v1075_v56 = vpop.permute.xlu0 %1074 }
 0x294   :  { %v1384_v58 = vld [vmem:[#allocation2 + $0x8] sm:$0xff]  ;;  %818 = vst.msk [vmem:[#allocation2 + $0x68] sm:$0xff] %vm684_vm2, %v800_v55 }
 0x295   :  { %1093 = vst.msk [vmem:[#allocation2 + $0x30] sm:$0xff] %vm1086_vm3, %v1075_v56  ;;  %v1407_v59 = vpack.c.bf16 %v1384_v58, %v1383_v57 }
 0x297   :  { %4639 = vmatprep.mubr.bf16.mxu1 %v1407_v59  ;;  %v1071_v62 = vpop.permute.xlu0 %1070  ;;  %v1077_v63 = vpop.permute.xlu1 %1076 }
 0x298   :  { %4640 = vmatmul.mubr.bf16.vlgmr.msra.gmra.mxu1 %v1408_v60  ;;  %1091 = vst.msk [vmem:[#allocation2 + $0x20] sm:$0xff] %vm1086_vm3, %v1071_v62  ;;  %1094 = vst.msk [vmem:[#allocation2 + $0x38] sm:$0xff] %vm1086_vm3, %v1077_v63 }
 0x299   :  { %4664 = vmatpush3.bf16.msra.mxu1 %v5421_v31 }
 0x29a   :  { %4665 = vmatprep.subr.bf16.mxu1 %v4775_v61 }
 0x29b   :  { %v922_v1 = vpop.permute.xlu0 %921  ;;  %v1073_v2 = vpop.permute.xlu1 %1072 }
 0x29c   :  { %943 = vst.msk [vmem:[#allocation2 + $0x90] sm:$0xff] %vm684_vm2, %v922_v1  ;;  %v1389_v12 = vld [vmem:[#allocation2 + $0x30] sm:$0xff] }
 0x29d   :  { %1092 = vst.msk [vmem:[#allocation2 + $0x28] sm:$0xff] %vm1086_vm3, %v1073_v2  ;;  %4666 = vmatpush3.bf16.msra.mxu1 %v4775_v61 }
 0x29e   :  { %4667 = vmatprep.subr.bf16.mxu1 %v4776_v0 }
 0x29f   :  { %v918_v4 = vpop.permute.xlu0 %917  ;;  %v924_v5 = vpop.permute.xlu1 %923  ;;  %v1390_v6 = vld [vmem:[#allocation2 + $0x38] sm:$0xff]  ;;  %v1387_v9 = vld [vmem:[#allocation2 + $0x20] sm:$0xff] }
 0x2a0   :  { %941 = vst.msk [vmem:[#allocation2 + $0x80] sm:$0xff] %vm684_vm2, %v918_v4  ;;  %944 = vst.msk [vmem:[#allocation2 + $0x98] sm:$0xff] %vm684_vm2, %v924_v5  ;;  %v1410_v13 = vpack.c.bf16 %v1390_v6, %v1389_v12 }
 0x2a1   :  { %4668 = vmatpush3.bf16.msra.mxu1 %v4776_v0 }
 0x2a2   :  { %4669 = vmatprep.subr.bf16.mxu1 %v4777_v3 }
 0x2a3   :  { %v920_v7 = vpop.permute.xlu1 %919  ;;  %v1352_v8 = vpop.permute.xlu0 %1351 }
 0x2a4   :  { %v1388_v10 = vld [vmem:[#allocation2 + $0x28] sm:$0xff]  ;;  %942 = vst.msk [vmem:[#allocation2 + $0x88] sm:$0xff] %vm684_vm2, %v920_v7 }
 0x2a5   :  { %1375 = vst.msk [vmem:[#allocation2 + $0x80] sm:$0xff] %vm1086_vm3, %v1352_v8  ;;  %v1409_v11 = vpack.c.bf16 %v1388_v10, %v1387_v9  ;;  %4670 = vmatpush3.bf16.msra.mxu1 %v4777_v3 }
 0x2a7   :  { %4643 = vmatprep.mubr.bf16.mxu1 %v1409_v11  ;;  %v1354_v14 = vpop.permute.xlu1 %1353 }
 0x2a8   :  { %4644 = vmatmul.mubr.bf16.gmra.mxu1 %v1410_v13  ;;  %1376 = vst.msk [vmem:[#allocation2 + $0x88] sm:$0xff] %vm1086_vm3, %v1354_v14 }
 0x2ab   :  { %v1212_v15 = vpop.permute.xlu0 %1211 }
 0x2ac   :  { %1233 = vst.msk [vmem:[#allocation2 + $0x50] sm:$0xff] %vm1086_vm3, %v1212_v15  ;;  %v1399_v41 = vld [vmem:[#allocation2 + $0x80] sm:$0xff] }
 0x2af   :  { %v1208_v16 = vpop.permute.xlu0 %1207  ;;  %v1214_v17 = vpop.permute.xlu1 %1213  ;;  %v1400_v37 = vld [vmem:[#allocation2 + $0x88] sm:$0xff] }
 0x2b0   :  { %1231 = vst.msk [vmem:[#allocation2 + $0x40] sm:$0xff] %vm1086_vm3, %v1208_v16  ;;  %1234 = vst.msk [vmem:[#allocation2 + $0x58] sm:$0xff] %vm1086_vm3, %v1214_v17  ;;  %v1415_v42 = vpack.c.bf16 %v1400_v37, %v1399_v41 }
 0x2b3   :  { %v1220_v18 = vpop.permute.xlu0 %1219  ;;  %v1210_v19 = vpop.permute.xlu1 %1209  ;;  %v1393_v28 = vld [vmem:[#allocation2 + $0x50] sm:$0xff] }
 0x2b4   :  { %1237 = vst.msk [vmem:[#allocation2 + $0x70] sm:$0xff] %vm1086_vm3, %v1220_v18  ;;  %1232 = vst.msk [vmem:[#allocation2 + $0x48] sm:$0xff] %vm1086_vm3, %v1210_v19 }
 0x2b7   :  { %v1216_v20 = vpop.permute.xlu0 %1215  ;;  %v1222_v21 = vpop.permute.xlu1 %1221  ;;  %v1394_v22 = vld [vmem:[#allocation2 + $0x58] sm:$0xff]  ;;  %v1391_v25 = vld [vmem:[#allocation2 + $0x40] sm:$0xff] }
 0x2b8   :  { %1235 = vst.msk [vmem:[#allocation2 + $0x60] sm:$0xff] %vm1086_vm3, %v1216_v20  ;;  %1238 = vst.msk [vmem:[#allocation2 + $0x78] sm:$0xff] %vm1086_vm3, %v1222_v21  ;;  %v1412_v29 = vpack.c.bf16 %v1394_v22, %v1393_v28  ;;  %v2035_v28 = vld [vmem:[%s6265_s8 + $0x10] sm:$0xff] }
 0x2bb   :  { %v1356_v23 = vpop.permute.xlu0 %1355  ;;  %v1218_v24 = vpop.permute.xlu1 %1217  ;;  %v1392_v26 = vld [vmem:[#allocation2 + $0x48] sm:$0xff]  ;;  %v1397_v39 = vld [vmem:[#allocation2 + $0x70] sm:$0xff] }
 0x2bc   :  { %1377 = vst.msk [vmem:[#allocation2 + $0x90] sm:$0xff] %vm1086_vm3, %v1356_v23  ;;  %1236 = vst.msk [vmem:[#allocation2 + $0x68] sm:$0xff] %vm1086_vm3, %v1218_v24  ;;  %v1411_v27 = vpack.c.bf16 %v1392_v26, %v1391_v25  ;;  %v6275_v23 = vmov 0   ;;  %v4778_v24 = vld [vmem:[#allocation9] sm:$0xff]   ;;  %v2007_v25 = vld [vmem:[%s6264_s7 + $0x10] sm:$0xff] }
 0x2bd   :  { %1680 = vmatprep.subr.bf16.mxu0 %v6275_v23  ;;  %4738 = vset.pattern.permute.xlu1 %v6275_v23  ;;  %v2008_v26 = vld [vmem:[%s6264_s7 + $0x18] sm:$0xff] }
 0x2be   :  { %4647 = vmatprep.mubr.bf16.mxu1 %v1411_v27  ;;  %4737 = vset.pattern.permute.xlu0 %v6275_v23  ;;  %v2036_v27 = vld [vmem:[%s6265_s8 + $0x18] sm:$0xff] }
 0x2bf   :  { %v926_v30 = vpop.permute.xlu0 %925  ;;  %4648 = vmatmul.mubr.bf16.gmra.mxu1 %v1412_v29  ;;  %v1358_v31 = vpop.permute.xlu1 %1357  ;;  %v1398_v32 = vld [vmem:[#allocation2 + $0x78] sm:$0xff]  ;;  %v1395_v35 = vld [vmem:[#allocation2 + $0x60] sm:$0xff]  ;;  %2021 = vperm.xlu0 %4737, %v2007_v25   ;;  %v2006_v29 = vld [vmem:[%s6264_s7 + $0x8] sm:$0xff] }
 0x2c0   :  { %945 = vst.msk [vmem:[#allocation2 + $0xa0] sm:$0xff] %vm684_vm2, %v926_v30  ;;  %v1414_v40 = vpack.c.bf16 %v1398_v32, %v1397_v39  ;;  %2026 = vperm.xlu1 %4738, %v2008_v26   ;;  %v2005_v30 = vld [vmem:[%s6264_s7] sm:$0xff] }
 0x2c1   :  { %1378 = vst.msk [vmem:[#allocation2 + $0x98] sm:$0xff] %vm1086_vm3, %v1358_v31  ;;  %v2034_v31 = vld [vmem:[%s6265_s8 + $0x8] sm:$0xff]  ;;  %v2033_v32 = vld [vmem:[%s6265_s8] sm:$0xff] }
 0x2c2   :  { %v4779_v26 = vld [vmem:[#allocation9 + $0x8] sm:$0xff]  }
 0x2c3   :  { %v930_v33 = vpop.permute.xlu0 %929  ;;  %v928_v34 = vpop.permute.xlu1 %927  ;;  %v1396_v36 = vld [vmem:[#allocation2 + $0x68] sm:$0xff]  ;;  %v1401_v48 = vld [vmem:[#allocation2 + $0x90] sm:$0xff]  ;;  %2054 = vperm.xlu0 %4737, %v2036_v27   ;;  %v4784_v27 = vld [vmem:[#allocation6 + $0x4] ss:$8 sps:$4 sm:$0xff]  }
 0x2c4   :  { %947 = vst.msk [vmem:[#allocation2 + $0xb0] sm:$0xff] %vm684_vm2, %v930_v33  ;;  %946 = vst.msk [vmem:[#allocation2 + $0xa8] sm:$0xff] %vm684_vm2, %v928_v34  ;;  %v1413_v38 = vpack.c.bf16 %v1396_v36, %v1395_v35  ;;  %2049 = vperm.xlu1 %4738, %v2035_v28   ;;  %v3166_v33 = vld [vmem:[%s6269_s12] sm:$0xf]  ;;  %4150 = vmatprep.mubr.msk.bf16.mxu0 %vm684_vm2, %v4784_v27 }
 0x2c5   :  { %v2296_v34 = vld [vmem:[%s6269_s12] sm:$0xf] }
 0x2c6   :  { %4651 = vmatprep.mubr.bf16.mxu1 %v1413_v38  ;;  %v4780_v28 = vld [vmem:[%s6266_s9] sm:$0xff]  }
 0x2c7   :  { %4652 = vmatmul.mubr.bf16.gmra.mxu1 %v1414_v40  ;;  %v932_v43 = vpop.permute.xlu1 %931  ;;  %v1360_v44 = vpop.permute.xlu0 %1359  ;;  %2016 = vperm.xlu0 %4737, %v2006_v29   ;;  %v4782_v29 = vld [vmem:[#allocation6] ss:$8 sps:$4 sm:$0xff]  }
 0x2c8   :  { %948 = vst.msk [vmem:[#allocation2 + $0xb8] sm:$0xff] %vm684_vm2, %v932_v43  ;;  %4655 = vmatprep.mubr.bf16.mxu1 %v1415_v42  ;;  %v1402_v45 = vld [vmem:[#allocation2 + $0x98] sm:$0xff]  ;;  %2011 = vperm.xlu1 %4738, %v2005_v30   ;;  %v4787_v30 = vld [vmem:[#allocation6 + $0x14] ss:$8 sps:$4 sm:$0xff]  }
 0x2c9   :  { %1379 = vst.msk [vmem:[#allocation2 + $0xa0] sm:$0xff] %vm1086_vm3, %v1360_v44  ;;  %v1416_v49 = vpack.c.bf16 %v1402_v45, %v1401_v48 }
 0x2cb   :  { %v1364_v46 = vpop.permute.xlu0 %1363  ;;  %v1362_v47 = vpop.permute.xlu1 %1361  ;;  %2044 = vperm.xlu0 %4737, %v2034_v31   ;;  %v4789_v31 = vld [vmem:[#allocation6 + $0x10] ss:$8 sps:$4 sm:$0xff]  }
 0x2cc   :  { %1381 = vst.msk [vmem:[#allocation2 + $0xb0] sm:$0xff] %vm1086_vm3, %v1364_v46  ;;  %1380 = vst.msk [vmem:[#allocation2 + $0xa8] sm:$0xff] %vm1086_vm3, %v1362_v47  ;;  %2039 = vperm.xlu1 %4738, %v2033_v32   ;;  %v4790_v32 = vld [vmem:[#allocation6 + $0x24] ss:$8 sps:$4 sm:$0xff]  }
 0x2cf   :  { %v1038_v50 = vpop.permute.xlu0 %1037  ;;  %v1366_v51 = vpop.permute.xlu1 %1365  ;;  %4656 = vmatmul.mubr.bf16.gmra.mxu1 %v1416_v49  ;;  %3169 = vperm.xlu0 %4737, %v3166_v33   ;;  %v4792_v33 = vld [vmem:[#allocation6 + $0x20] ss:$8 sps:$4 sm:$0xff]  }
 0x2d0   :  { %1050 = vst.msk [vmem:[#allocation3] sm:$0xff] %vm1049_vm4, %v1038_v50  ;;  %v1403_v54 = vld [vmem:[#allocation2 + $0xa0] sm:$0xff]  ;;  %2299 = vperm.xlu1 %4738, %v2296_v34   ;;  %v4793_v34 = vld [vmem:[#allocation6 + $0x34] ss:$8 sps:$4 sm:$0xff]  }
 0x2d1   :  { %1382 = vst.msk [vmem:[#allocation2 + $0xb8] sm:$0xff] %vm1086_vm3, %v1366_v51 }
 0x2d3   :  { %v1042_v52 = vpop.permute.xlu0 %1041  ;;  %v1040_v53 = vpop.permute.xlu1 %1039  ;;  %v1404_v55 = vld [vmem:[#allocation2 + $0xa8] sm:$0xff]  ;;  %v1405_v59 = vld [vmem:[#allocation2 + $0xb0] sm:$0xff] }
 0x2d4   :  { %1052 = vst.msk [vmem:[#allocation3 + $0x10] sm:$0xff] %vm1049_vm4, %v1042_v52  ;;  %1051 = vst.msk [vmem:[#allocation3 + $0x8] sm:$0xff] %vm1049_vm4, %v1040_v53  ;;  %v1417_v56 = vpack.c.bf16 %v1404_v55, %v1403_v54 }
 0x2d6   :  { %4659 = vmatprep.mubr.bf16.mxu1 %v1417_v56 }
 0x2d7   :  { %v1184_v57 = vpop.permute.xlu0 %1183  ;;  %v1044_v58 = vpop.permute.xlu1 %1043  ;;  %v1745_v0 = vld [vmem:[#allocation3] sm:$0xff] }
 0x2d8   :  { %v1406_v60 = vld [vmem:[#allocation2 + $0xb8] sm:$0xff]  ;;  %1195 = vst.msk [vmem:[#allocation3 + $0x20] sm:$0xff] %vm1049_vm4, %v1184_v57  ;;  %1053 = vst.msk [vmem:[#allocation3 + $0x18] sm:$0xff] %vm1049_vm4, %v1044_v58 }
 0x2d9   :  { %v1418_v61 = vpack.c.bf16 %v1406_v60, %v1405_v59 }
 0x2db   :  { %4660 = vmatmul.mubr.bf16.gmra.mxu1 %v1418_v61  ;;  %v1188_v62 = vpop.permute.xlu0 %1187  ;;  %v1186_v63 = vpop.permute.xlu1 %1185  ;;  %v1746_v1 = vld [vmem:[#allocation3 + $0x8] sm:$0xff]  ;;  %v1747_v5 = vld [vmem:[#allocation3 + $0x10] sm:$0xff] }
 0x2dc   :  { %1197 = vst.msk [vmem:[#allocation3 + $0x30] sm:$0xff] %vm1049_vm4, %v1188_v62  ;;  %1196 = vst.msk [vmem:[#allocation3 + $0x28] sm:$0xff] %vm1049_vm4, %v1186_v63  ;;  %v1757_v2 = vpack.c.bf16 %v1746_v1, %v1745_v0 }
 0x2de   :  { %4671 = vmatprep.mubr.msk.bf16.mxu1 %vm684_vm2, %v1757_v2 }
 0x2df   :  { %v1328_v3 = vpop.permute.xlu0 %1327  ;;  %v1190_v4 = vpop.permute.xlu1 %1189  ;;  %v1748_v6 = vld [vmem:[#allocation3 + $0x18] sm:$0xff]  ;;  %v1749_v10 = vld [vmem:[#allocation3 + $0x20] sm:$0xff] }
 0x2e0   :  { %1339 = vst.msk [vmem:[#allocation3 + $0x40] sm:$0xff] %vm1049_vm4, %v1328_v3  ;;  %1198 = vst.msk [vmem:[#allocation3 + $0x38] sm:$0xff] %vm1049_vm4, %v1190_v4  ;;  %v1758_v7 = vpack.c.bf16 %v1748_v6, %v1747_v5 }
 0x2e3   :  { %4672 = vmatmul.mubr.msk.bf16.vlgmr.msra.gmra.mxu1 %vm684_vm2, %v1758_v7  ;;  %v1332_v8 = vpop.permute.xlu0 %1331  ;;  %v1330_v9 = vpop.permute.xlu1 %1329  ;;  %v1750_v11 = vld [vmem:[#allocation3 + $0x28] sm:$0xff]  ;;  %v1751_v14 = vld [vmem:[#allocation3 + $0x30] sm:$0xff] }
 0x2e4   :  { %1341 = vst.msk [vmem:[#allocation3 + $0x50] sm:$0xff] %vm1049_vm4, %v1332_v8  ;;  %1340 = vst.msk [vmem:[#allocation3 + $0x48] sm:$0xff] %vm1049_vm4, %v1330_v9  ;;  %v1759_v12 = vpack.c.bf16 %v1750_v11, %v1749_v10 }
 0x2e6   :  { %4675 = vmatprep.mubr.msk.bf16.mxu1 %vm684_vm2, %v1759_v12 }
 0x2e7   :  { %v1334_v13 = vpop.permute.xlu1 %1333  ;;  %v1752_v15 = vld [vmem:[#allocation3 + $0x38] sm:$0xff]  ;;  %v1753_v17 = vld [vmem:[#allocation3 + $0x40] sm:$0xff] }
 0x2e8   :  { %1342 = vst.msk [vmem:[#allocation3 + $0x58] sm:$0xff] %vm1049_vm4, %v1334_v13  ;;  %v1760_v16 = vpack.c.bf16 %v1752_v15, %v1751_v14 }
 0x2eb   :  { %4676 = vmatmul.mubr.msk.bf16.gmra.mxu1 %vm684_vm2, %v1760_v16  ;;  %v1754_v18 = vld [vmem:[#allocation3 + $0x48] sm:$0xff]  ;;  %v1755_v20 = vld [vmem:[#allocation3 + $0x50] sm:$0xff] }
 0x2ec   :  { %v1761_v19 = vpack.c.bf16 %v1754_v18, %v1753_v17 }
 0x2ee   :  { %4679 = vmatprep.mubr.msk.bf16.mxu1 %vm684_vm2, %v1761_v19 }
 0x2ef   :  { %v1756_v21 = vld [vmem:[#allocation3 + $0x58] sm:$0xff] }
 0x2f0   :  { %v1762_v22 = vpack.c.bf16 %v1756_v21, %v1755_v20 }
 0x2f3   :  { %4680 = vmatmul.mubr.msk.bf16.gmra.mxu1 %vm684_vm2, %v1762_v22 }
 0x2f4   :  { %4695 = vmatprep.mubr.msk.bf16.mxu1 %vm1914_vm5, %v4778_v24 }
 0x358   :  { %v4641_v35 = vpop.f32.mrf.mxu1 }
 0x35a   :  { %v1517_v36 = vpop.f32.mrf.mxu1 }
 0x35c   :  { %v4642_v37 = vpop.f32.mrf.mxu1 }
 0x35d   :  { %v1621_v2 = vpack.c.bf16 %v4642_v37, %v4641_v35  ;;  %v4795_v35 = vld [vmem:[#allocation6 + $0x30] ss:$8 sps:$4 sm:$0xff]  }
 0x35e   :  { %v1520_v38 = vpop.f32.mrf.mxu1 }
 0x35f   :  { %v1620_v5 = vpack.c.bf16 %v1520_v38, %v1517_v36 }
 0x368   :  { %v4645_v39 = vpop.f32.mrf.mxu1 }
 0x36a   :  { %v1533_v40 = vpop.f32.mrf.mxu1 }
 0x36c   :  { %v4646_v41 = vpop.f32.mrf.mxu1 }
 0x36d   :  { %v1623_v60 = vpack.c.bf16 %v4646_v41, %v4645_v39 }
 0x36e   :  { %v1536_v42 = vpop.f32.mrf.mxu1 }
 0x36f   :  { %v1622_v63 = vpack.c.bf16 %v1536_v42, %v1533_v40 }
 0x37f   :  { %v4649_v43 = vpop.f32.mrf.mxu1 }
 0x381   :  { %v1549_v44 = vpop.f32.mrf.mxu1 }
 0x383   :  { %v4650_v45 = vpop.f32.mrf.mxu1 }
 0x384   :  { %v1625_v55 = vpack.c.bf16 %v4650_v45, %v4649_v43 }
 0x385   :  { %v1552_v46 = vpop.f32.mrf.mxu1 }
 0x386   :  { %v1624_v57 = vpack.c.bf16 %v1552_v46, %v1549_v44 }
 0x387   :  { %v4653_v47 = vpop.f32.mrf.mxu1 }
 0x389   :  { %v1565_v48 = vpop.f32.mrf.mxu1 }
 0x38b   :  { %v4654_v49 = vpop.f32.mrf.mxu1 }
 0x38c   :  { %v1627_v50 = vpack.c.bf16 %v4654_v49, %v4653_v47 }
 0x38d   :  { %v1568_v51 = vpop.f32.mrf.mxu1 }
 0x38e   :  { %1681 = vmatpush1.bf16.msra.mxu0 %v1627_v50  ;;  %v1626_v53 = vpack.c.bf16 %v1568_v51, %v1565_v48 }
 0x38f   :  { %v4657_v52 = vpop.f32.mrf.mxu1  ;;  %1682 = vmatprep.subr.bf16.mxu0 %v6275_v23 }
 0x391   :  { %v1581_v54 = vpop.f32.mrf.mxu1 }
 0x392   :  { %1683 = vmatpush1.bf16.msra.mxu0 %v1626_v53 }
 0x393   :  { %1684 = vmatprep.subr.bf16.mxu0 %v6275_v23  ;;  %v4658_v56 = vpop.f32.mrf.mxu1 }
 0x394   :  { %v1629_v14 = vpack.c.bf16 %v4658_v56, %v4657_v52 }
 0x395   :  { %v1584_v58 = vpop.f32.mrf.mxu1 }
 0x396   :  { %1685 = vmatpush1.bf16.msra.mxu0 %v1625_v55  ;;  %v1628_v18 = vpack.c.bf16 %v1584_v58, %v1581_v54 }
 0x397   :  { %1686 = vmatprep.subr.bf16.mxu0 %v6275_v23 }
 0x39a   :  { %1687 = vmatpush1.bf16.msra.mxu0 %v1624_v57 }
 0x39b   :  { %v4661_v59 = vpop.f32.mrf.mxu1  ;;  %1688 = vmatprep.subr.bf16.mxu0 %v6275_v23 }
 0x39d   :  { %v1597_v61 = vpop.f32.mrf.mxu1 }
 0x39e   :  { %1689 = vmatpush1.bf16.msra.mxu0 %v1623_v60 }
 0x39f   :  { %v4662_v62 = vpop.f32.mrf.mxu1  ;;  %1690 = vmatprep.subr.bf16.mxu0 %v6275_v23 }
 0x3a0   :  { %v1631_v8 = vpack.c.bf16 %v4662_v62, %v4661_v59 }
 0x3a1   :  { %v1600_v0 = vpop.f32.mrf.mxu1 }
 0x3a2   :  { %1691 = vmatpush1.bf16.msra.mxu0 %v1622_v63  ;;  %v1630_v11 = vpack.c.bf16 %v1600_v0, %v1597_v61 }
 0x3a3   :  { %v4673_v1 = vpop.f32.mrf.mxu1  ;;  %1692 = vmatprep.subr.bf16.mxu0 %v6275_v23 }
 0x3a5   :  { %v1847_v3 = vpop.f32.mrf.mxu1 }
 0x3a6   :  { %1693 = vmatpush1.bf16.msra.mxu0 %v1621_v2 }
 0x3a7   :  { %v4674_v4 = vpop.f32.mrf.mxu1  ;;  %1694 = vmatprep.subr.bf16.mxu0 %v6275_v23 }
 0x3a8   :  { %v1899_v24 = vpack.c.bf16 %v4674_v4, %v4673_v1 }
 0x3a9   :  { %v1850_v6 = vpop.f32.mrf.mxu1 }
 0x3aa   :  { %1695 = vmatpush1.bf16.msra.mxu0 %v1620_v5  ;;  %v1898_v25 = vpack.c.bf16 %v1850_v6, %v1847_v3  ;;  %v2022_v5 = vpop.permute.xlu0 %2021  ;;  %v2027_v6 = vpop.permute.xlu1 %2026 }
 0x3ab   :  { %v4677_v7 = vpop.f32.mrf.mxu1  ;;  %1704 = vmatprep.subr.bf16.mxu0 %v6275_v23 }
 0x3ad   :  { %v1863_v9 = vpop.f32.mrf.mxu1 }
 0x3ae   :  { %1705 = vmatpush2.bf16.msra.mxu0 %v1631_v8  ;;  %v2050_v8 = vpop.permute.xlu1 %2049 }
 0x3af   :  { %v4678_v10 = vpop.f32.mrf.mxu1  ;;  %1706 = vmatprep.subr.bf16.mxu0 %v6275_v23 }
 0x3b0   :  { %v1901_v21 = vpack.c.bf16 %v4678_v10, %v4677_v7  ;;  %v2055_v7 = vpop.permute.xlu0 %2054 }
 0x3b1   :  { %v1866_v12 = vpop.f32.mrf.mxu1 }
 0x3b2   :  { %1707 = vmatpush2.bf16.msra.mxu0 %v1630_v11  ;;  %v1900_v22 = vpack.c.bf16 %v1866_v12, %v1863_v9  ;;  %v2012_v10 = vpop.permute.xlu1 %2011 }
 0x3b3   :  { %v4681_v13 = vpop.f32.mrf.mxu1  ;;  %1708 = vmatprep.subr.bf16.mxu0 %v6275_v23 }
 0x3b4   :  { %v2017_v9 = vpop.permute.xlu0 %2016 }
 0x3b5   :  { %v1879_v15 = vpop.f32.mrf.mxu1 }
 0x3b6   :  { %1709 = vmatpush2.bf16.msra.mxu0 %v1629_v14 }
 0x3b7   :  { %v4682_v16 = vpop.f32.mrf.mxu1  ;;  %1710 = vmatprep.subr.bf16.mxu0 %v6275_v23 }
 0x3b8   :  { %v1903_v17 = vpack.c.bf16 %v4682_v16, %v4681_v13 }
 0x3b9   :  { %v1882_v19 = vpop.f32.mrf.mxu1 }
 0x3ba   :  { %v1902_v20 = vpack.c.bf16 %v1882_v19, %v1879_v15  ;;  %4683 = vmatprep.subr.bf16.mxu1 %v1903_v17  ;;  %1711 = vmatpush2.bf16.msra.mxu0 %v1628_v18 }
 0x3bb   :  { %4684 = vmatpush3.bf16.msra.mxu1 %v1903_v17 }
 0x3bc   :  { %4685 = vmatprep.subr.bf16.mxu1 %v1902_v20 }
 0x3bd   :  { %1713 = vmatmul.mubr.bf16.vlgmr.msra.gmra.mxu0 %v4782_v29  ;;  %v4781_v29 = vld [vmem:[%s6266_s9 + $0x8] sm:$0xff]  }
 0x3be   :  { %4151 = vmatprep.mubr.msk.bf16.mxu0 %vm684_vm2, %v4787_v30  ;;  %v4785_v30 = vld [vmem:[%s6266_s9 + $0x10] sm:$0xff]  }
 0x3bf   :  { %4686 = vmatpush3.bf16.msra.mxu1 %v1902_v20  ;;  %v2045_v20 = vpop.permute.xlu0 %2044 }
 0x3c0   :  { %4687 = vmatprep.subr.bf16.mxu1 %v1901_v21 }
 0x3c3   :  { %4688 = vmatpush3.bf16.msra.mxu1 %v1901_v21  ;;  %v2040_v21 = vpop.permute.xlu1 %2039 }
 0x3c4   :  { %4689 = vmatprep.subr.bf16.mxu1 %v1900_v22 }
 0x3c5   :  { %1721 = vmatmul.mubr.bf16.gmra.mxu0 %v4789_v31  ;;  %v4786_v31 = vld [vmem:[%s6266_s9 + $0x18] sm:$0xff]  }
 0x3c6   :  { %4152 = vmatprep.mubr.msk.bf16.mxu0 %vm684_vm2, %v4790_v32 }
 0x3c7   :  { %4690 = vmatpush3.bf16.msra.mxu1 %v1900_v22 }
 0x3c8   :  { %4691 = vmatprep.subr.bf16.mxu1 %v1899_v24 }
 0x3cb   :  { %4692 = vmatpush3.bf16.msra.mxu1 %v1899_v24 }
 0x3cc   :  { %4693 = vmatprep.subr.bf16.mxu1 %v1898_v25 }
 0x3cd   :  { %1729 = vmatmul.mubr.bf16.gmra.mxu0 %v4792_v33 }
 0x3ce   :  { %4153 = vmatprep.mubr.msk.bf16.mxu0 %vm684_vm2, %v4793_v34 }
 0x3cf   :  { %4694 = vmatpush3.bf16.msra.mxu1 %v1898_v25 }
 0x3d2   :  { %4696 = vmatmul.mubr.msk.bf16.vlgmr.msra.gmra.mxu1 %vm1914_vm5, %v4779_v26 }
 0x3d3   :  { %4703 = vmatprep.mubr.msk.bf16.mxu1 %vm647_vm1, %v4780_v28 }
 0x3d5   :  { %1737 = vmatmul.mubr.bf16.gmra.mxu0 %v4795_v35 }
 0x47d   :  { %v5585_v32 = vpop.f32.mrf.mxu0 }
 0x47f   :  { %v1716_v33 = vpop.f32.mrf.mxu0 }
 0x481   :  { %v5587_v34 = vpop.f32.mrf.mxu0 }
 0x483   :  { %v1719_v35 = vpop.f32.mrf.mxu0 }
 0x492   :  { %v4697_v36 = vpop.f32.mrf.mxu1 }
 0x494   :  { %v1955_v37 = vpop.f32.mrf.mxu1 }
 0x496   :  { %v4698_v38 = vpop.f32.mrf.mxu1 }
 0x498   :  { %v1958_v39 = vpop.f32.mrf.mxu1 }
 0x499   :  { %v1970_v40 = vadd.f32 %v1958_v39, %v1955_v37 }
 0x49b   :  { %v1971_v41 = vadd.f32 %v4697_v36, %v1970_v40 }
 0x49d   :  { %v1972_v42 = vadd.f32 %v4698_v38, %v1971_v41 }
 0x49f   :  { %v1973_v43 = vrot.slane %v1972_v42, 4 }
 0x4a1   :  { %v1974_v44 = vadd.f32 %v1973_v43, %v1972_v42 }
 0x4a3   :  { %v1975_v45 = vrot.slane %v1974_v44, 2 }
 0x4a5   :  { %v1976_v46 = vadd.f32 %v1975_v45, %v1974_v44 }
 0x4a7   :  { %v1977_v47 = vrot.slane %v1976_v46, 1 }
 0x4a9   :  { %v1978_v48 = vadd.f32 %v1977_v47, %v1976_v46 }
 0x4ab   :  { %v1980_v49 = vmul.f32 0.03125, %v1978_v48  ;;  %v5040_v48 = vmov 0.0  }
 0x4ac   :  { %4711 = vmatprep.subr.bf16.mxu0 %v5040_v48  ;;  %4719 = vmatprep.mubr.msk.bf16.mxu0 %vm5041_vm6, %v5040_v48 }
 0x4ad   :  { %v1981_v50 = vsub.f32 %v1955_v37, %v1980_v49  ;;  %v1982_v51 = vsub.f32 %v1958_v39, %v1980_v49  ;;  %v1983_v52 = vsub.f32 %v4697_v36, %v1980_v49  ;;  %v1984_v53 = vsub.f32 %v4698_v38, %v1980_v49  ;;  %v5589_v36 = vpop.f32.mrf.mxu0  ;;  %v5606_v49 = vld [vmem:[%s6271_s14 + $0x1b0] ss:$72 sps:$4 sm:$0xff]  }
 0x4af   :  { %v1985_v54 = vmul.f32 %v1981_v50, %v1981_v50  ;;  %v1986_v55 = vmul.f32 %v1982_v51, %v1982_v51  ;;  %v1987_v57 = vmul.f32 %v1983_v52, %v1983_v52  ;;  %v1988_v58 = vmul.f32 %v1984_v53, %v1984_v53  ;;  %v1724_v37 = vpop.f32.mrf.mxu0 }
 0x4b0   :  { %v2232_v37 = vld [vmem:[#allocation11] sm:$0xff] }
 0x4b1   :  { %v1989_v56 = vadd.f32 %v1986_v55, %v1985_v54  ;;  %v5591_v38 = vpop.f32.mrf.mxu0  ;;  %v5635_v54 = vld [vmem:[%s6271_s14 + $0x90] ss:$72 sps:$4 sm:$0xff]  }
 0x4b3   :  { %v1990_v59 = vadd.f32 %v1989_v56, %v1987_v57  ;;  %v1727_v39 = vpop.f32.mrf.mxu0 }
 0x4b4   :  { %v2217_v39 = vmul.f32 0.1, %v5587_v34 }
 0x4b5   :  { %v1991_v60 = vadd.f32 %v1990_v59, %v1988_v58  ;;  %v5593_v40 = vpop.f32.mrf.mxu0 }
 0x4b7   :  { %v1992_v61 = vrot.slane %v1991_v60, 4  ;;  %v1732_v41 = vpop.f32.mrf.mxu0 }
 0x4b9   :  { %v1993_v62 = vadd.f32 %v1992_v61, %v1991_v60  ;;  %v5595_v42 = vpop.f32.mrf.mxu0 }
 0x4bb   :  { %v1994_v63 = vrot.slane %v1993_v62, 2  ;;  %v1735_v43 = vpop.f32.mrf.mxu0 }
 0x4bc   :  { %v2219_v43 = vmul.f32 0.1, %v5591_v38 }
 0x4bd   :  { %v1995_v0 = vadd.f32 %v1994_v63, %v1993_v62  ;;  %v5597_v44 = vpop.f32.mrf.mxu0 }
 0x4bf   :  { %v1996_v1 = vrot.slane %v1995_v0, 1  ;;  %v1740_v45 = vpop.f32.mrf.mxu0 }
 0x4c1   :  { %v1997_v2 = vadd.f32 %v1996_v1, %v1995_v0  ;;  %v5599_v46 = vpop.f32.mrf.mxu0 }
 0x4c3   :  { %v1998_v3 = vmul.f32 0.03125, %v1997_v2  ;;  %v1743_v47 = vpop.f32.mrf.mxu0 }
 0x4c5   :  { %v1999_v4 = vadd.f32 1e-06, %v1998_v3 }
 0x4c7   :  { %4904 = vrsqrt.f32 %v1999_v4 }
 0x4d4   :  { %v4905_v11 = vpop.eup %4904 }
 0x4d5   :  { %v2003_v12 = vmul.f32 %v4905_v11, %v1983_v52  ;;  %v2004_v13 = vmul.f32 %v4905_v11, %v1984_v53  ;;  %v2002_v14 = vmul.f32 %v4905_v11, %v1982_v51  ;;  %v2001_v15 = vmul.f32 %v4905_v11, %v1981_v50  ;;  %v5611_v50 = vld [vmem:[%s6271_s14 + $0x1b4] ss:$72 sps:$4 sm:$0xff]   ;;  %v5616_v51 = vld [vmem:[%s6271_s14 + $0x124] ss:$72 sps:$4 sm:$0xff]   ;;  %v5623_v52 = vld [vmem:[%s6271_s14 + $0x120] ss:$72 sps:$4 sm:$0xff]  }
 0x4d6   :  { %v5629_v53 = vld [vmem:[%s6271_s14 + $0x94] ss:$72 sps:$4 sm:$0xff]  }
 0x4d7   :  { %v2031_v16 = vmul.f32 %v2022_v5, %v2003_v12  ;;  %v2032_v17 = vmul.f32 %v2027_v6, %v2004_v13  ;;  %v2030_v18 = vmul.f32 %v2017_v9, %v2002_v14  ;;  %v2029_v19 = vmul.f32 %v2012_v10, %v2001_v15 }
 0x4d9   :  { %v2060_v22 = vadd.f32 %v2055_v7, %v2032_v17  ;;  %v2059_v24 = vadd.f32 %v2050_v8, %v2031_v16  ;;  %v2058_v25 = vadd.f32 %v2045_v20, %v2030_v18  ;;  %v2057_v26 = vadd.f32 %v2040_v21, %v2029_v19 }
 0x4db   :  { %v2070_v27 = vpack.c.bf16 %v2060_v22, %v2059_v24  ;;  %v2069_v28 = vpack.c.bf16 %v2058_v25, %v2057_v26  ;;  %v2216_v26 = vmul.f32 0.1, %v5585_v32  ;;  %v2235_v32 = vld [vmem:[#allocation11 + $0x18] sm:$0xff] }
 0x4dd   :  { %4699 = vmatprep.subr.bf16.mxu1 %v2070_v27 }
 0x4de   :  { %4700 = vmatpush3.bf16.msra.mxu1 %v2070_v27  ;;  %v2218_v27 = vmul.f32 0.1, %v5589_v36  ;;  %v2233_v36 = vld [vmem:[#allocation11 + $0x8] sm:$0xff] }
 0x4df   :  { %4701 = vmatprep.subr.bf16.mxu1 %v2069_v28 }
 0x4e2   :  { %4702 = vmatpush3.bf16.msra.mxu1 %v2069_v28 }
 0x4e3   :  { %2760 = vmatprep.subr.bf16.mxu1 %v5611_v50 }
 0x4e5   :  { %4704 = vmatmul.mubr.msk.bf16.vlgmr.msra.gmra.mxu1 %vm647_vm1, %v4781_v29 }
 0x4e6   :  { %4707 = vmatprep.mubr.msk.bf16.mxu1 %vm647_vm1, %v4785_v30  ;;  %2761 = vmatpush1.bf16.msra.mxu1 %v5606_v49 }
 0x4e7   :  { %2762 = vmatprep.subr.bf16.mxu1 %v5616_v51 }
 0x4ea   :  { %2763 = vmatpush1.bf16.msra.mxu1 %v5623_v52 }
 0x4eb   :  { %2764 = vmatprep.subr.bf16.mxu1 %v5629_v53 }
 0x4ed   :  { %4708 = vmatmul.mubr.msk.bf16.gmra.mxu1 %vm647_vm1, %v4786_v31 }
 0x4ee   :  { %2784 = vmatprep.mubr.bf16.mxu1 %v6275_v23  ;;  %2765 = vmatpush1.bf16.msra.mxu1 %v5635_v54 }
 0x5a5   :  { %v4705_v55 = vpop.f32.mrf.mxu1 }
 0x5a6   :  { %v2178_v56 = vmul.f32 0.70710677, %v4705_v55  ;;  %v2170_v8 = vmul.f32 0.5, %v4705_v55 }
 0x5a7   :  { %v2137_v57 = vpop.f32.mrf.mxu1 }
 0x5a8   :  { %4906 = verf.f32 %v2178_v56  ;;  %v2176_v58 = vmul.f32 0.70710677, %v2137_v57  ;;  %v2168_v12 = vmul.f32 0.5, %v2137_v57  ;;  %v2234_v57 = vld [vmem:[#allocation11 + $0x10] sm:$0xff] }
 0x5a9   :  { %v4706_v59 = vpop.f32.mrf.mxu1 }
 0x5aa   :  { %4908 = verf.f32 %v2176_v58  ;;  %v2179_v60 = vmul.f32 0.70710677, %v4706_v59  ;;  %v2171_v16 = vmul.f32 0.5, %v4706_v59 }
 0x5ab   :  { %v2140_v61 = vpop.f32.mrf.mxu1 }
 0x5ac   :  { %4910 = verf.f32 %v2179_v60  ;;  %v2177_v62 = vmul.f32 0.70710677, %v2140_v61  ;;  %v2169_v22 = vmul.f32 0.5, %v2140_v61  ;;  %v2222_v61 = vmul.f32 0.1, %v5597_v44 }
 0x5ad   :  { %v4709_v63 = vpop.f32.mrf.mxu1 }
 0x5ae   :  { %4912 = verf.f32 %v2177_v62  ;;  %v2182_v0 = vmul.f32 0.70710677, %v4709_v63  ;;  %v2174_v30 = vmul.f32 0.5, %v4709_v63 }
 0x5af   :  { %v2153_v1 = vpop.f32.mrf.mxu1 }
 0x5b0   :  { %4914 = verf.f32 %v2182_v0  ;;  %v2180_v2 = vmul.f32 0.70710677, %v2153_v1  ;;  %v2172_v55 = vmul.f32 0.5, %v2153_v1 }
 0x5b1   :  { %v4710_v3 = vpop.f32.mrf.mxu1 }
 0x5b2   :  { %4916 = verf.f32 %v2180_v2  ;;  %v2183_v4 = vmul.f32 0.70710677, %v4710_v3  ;;  %v2175_v59 = vmul.f32 0.5, %v4710_v3  ;;  %v2223_v3 = vmul.f32 0.1, %v5599_v46 }
 0x5b3   :  { %v2156_v5 = vpop.f32.mrf.mxu1 }
 0x5b4   :  { %4918 = verf.f32 %v2183_v4  ;;  %v2181_v6 = vmul.f32 0.70710677, %v2156_v5 }
 0x5b5   :  { %v4907_v7 = vpop.eup %4906 }
 0x5b6   :  { %v2194_v9 = vadd.f32 1.0, %v4907_v7  ;;  %4920 = verf.f32 %v2181_v6  ;;  %v2173_v7 = vmul.f32 0.5, %v2156_v5 }
 0x5b7   :  { %v4909_v10 = vpop.eup %4908 }
 0x5b8   :  { %v2202_v11 = vmul.f32 %v2194_v9, %v2170_v8  ;;  %v2192_v13 = vadd.f32 1.0, %v4909_v10 }
 0x5b9   :  { %v4911_v14 = vpop.eup %4910 }
 0x5ba   :  { %v2200_v15 = vmul.f32 %v2192_v13, %v2168_v12  ;;  %v2195_v17 = vadd.f32 1.0, %v4911_v14  ;;  %v2210_v19 = vmul.f32 0.9, %v2202_v11  ;;  %v2220_v12 = vmul.f32 0.1, %v5593_v40 }
 0x5bb   :  { %v4913_v18 = vpop.eup %4912 }
 0x5bc   :  { %v2208_v20 = vmul.f32 0.9, %v2200_v15  ;;  %v2203_v21 = vmul.f32 %v2195_v17, %v2171_v16  ;;  %v2193_v24 = vadd.f32 1.0, %v4913_v18  ;;  %v2226_v41 = vadd.f32 %v2218_v27, %v2210_v19  ;;  %v2238_v16 = vld [vmem:[#allocation11 + $0x30] sm:$0xff]  ;;  %v2239_v17 = vld [vmem:[#allocation11 + $0x38] sm:$0xff] }
 0x5bd   :  { %v4915_v25 = vpop.eup %4914 }
 0x5be   :  { %v2211_v28 = vmul.f32 0.9, %v2203_v21  ;;  %v2201_v29 = vmul.f32 %v2193_v24, %v2169_v22  ;;  %v2198_v31 = vadd.f32 1.0, %v4915_v25  ;;  %v2224_v35 = vadd.f32 %v2216_v26, %v2208_v20  ;;  %v2236_v21 = vld [vmem:[#allocation11 + $0x20] sm:$0xff]  ;;  %v2237_v22 = vld [vmem:[#allocation11 + $0x28] sm:$0xff] }
 0x5bf   :  { %v4917_v33 = vpop.eup %4916  ;;  %v2242_v6 = vadd.f32 %v2234_v57, %v2226_v41  ;;  %v2221_v20 = vmul.f32 0.1, %v5595_v42  ;;  %v5653_v42 = vld [vmem:[%s6271_s14 + $0x1bc] ss:$72 sps:$4 sm:$0xff]   ;;  %v5704_v41 = vld [vmem:[%s6271_s14] ss:$72 sps:$4 sm:$0xff]  }
 0x5c0   :  { %v2209_v45 = vmul.f32 0.9, %v2201_v29  ;;  %v2206_v47 = vmul.f32 %v2198_v31, %v2174_v30  ;;  %v2196_v56 = vadd.f32 1.0, %v4917_v33  ;;  %v2227_v60 = vadd.f32 %v2219_v43, %v2211_v28  ;;  %v2248_v29 = vld [vmem:[%s6268_s11] sm:$0xf] }
 0x5c1   :  { %v4919_v58 = vpop.eup %4918  ;;  %v2240_v4 = vadd.f32 %v2232_v37, %v2224_v35  ;;  %v5661_v30 = vld [vmem:[%s6271_s14 + $0x1b8] ss:$72 sps:$4 sm:$0xff]   ;;  %v5674_v31 = vld [vmem:[%s6271_s14 + $0x128] ss:$72 sps:$4 sm:$0xff]   ;;  %v5681_v33 = vld [vmem:[%s6271_s14 + $0x9c] ss:$72 sps:$4 sm:$0xff]  }
 0x5c2   :  { %v2225_v62 = vadd.f32 %v2217_v39, %v2209_v45  ;;  %v2214_v63 = vmul.f32 0.9, %v2206_v47  ;;  %v2204_v0 = vmul.f32 %v2196_v56, %v2172_v55  ;;  %v2199_v2 = vadd.f32 1.0, %v4919_v58  ;;  %v5687_v35 = vld [vmem:[%s6271_s14 + $0x98] ss:$72 sps:$4 sm:$0xff]   ;;  %v3170_v55 = vpop.permute.xlu0 %3169  ;;  %v2300_v56 = vpop.permute.xlu1 %2299 }
 0x5c3   :  { %v4921_v34 = vpop.eup %4920  ;;  %v2243_v38 = vadd.f32 %v2235_v32, %v2227_v60  ;;  %v5694_v37 = vld [vmem:[%s6271_s14 + $0x4] ss:$72 sps:$4 sm:$0xff]   ;;  %v5709_v43 = vld [vmem:[%s6271_s14 + $0x8] ss:$72 sps:$4 sm:$0xff]  }
 0x5c4   :  { %v2241_v8 = vadd.f32 %v2233_v36, %v2225_v62  ;;  %v2212_v1 = vmul.f32 0.9, %v2204_v0  ;;  %v2207_v9 = vmul.f32 %v2199_v2, %v2175_v59  ;;  %v2197_v10 = vadd.f32 1.0, %v4921_v34  ;;  %v5699_v39 = vld [vmem:[%s6271_s14 + $0xc] ss:$72 sps:$4 sm:$0xff]   ;;  %2766 = vmatprep.subr.bf16.mxu1 %v5694_v37 }
 0x5c5   :  { %v2250_v11 = vpack.c.bf16 %v2243_v38, %v2242_v6  ;;  %v2230_v15 = vadd.f32 %v2222_v61, %v2214_v63  ;;  %2767 = vmatpush1.bf16.msra.mxu1 %v5704_v41  ;;  %v5718_v45 = vld [vmem:[%s6271_s14 + $0x1c4] ss:$72 sps:$4 sm:$0xff]   ;;  %v5736_v36 = vld [vmem:[%s6271_s14 + $0x1c0] ss:$72 sps:$4 sm:$0xff]   ;;  %v5748_v63 = vld [vmem:[%s6271_s14 + $0x134] ss:$72 sps:$4 sm:$0xff]  }
 0x5c6   :  { %v2249_v13 = vpack.c.bf16 %v2241_v8, %v2240_v4  ;;  %v2215_v44 = vmul.f32 0.9, %v2207_v9  ;;  %v2205_v14 = vmul.f32 %v2197_v10, %v2173_v7  ;;  %v2228_v19 = vadd.f32 %v2220_v12, %v2212_v1  ;;  %v5723_v47 = vld [vmem:[%s6271_s14 + $0x1cc] ss:$72 sps:$4 sm:$0xff]   ;;  %2842 = vmatprep.subr.bf16.mxu1 %v5718_v45  ;;  %v5743_v61 = vld [vmem:[%s6271_s14 + $0x1c8] ss:$72 sps:$4 sm:$0xff]  }
 0x5c7   :  { %v2246_v25 = vadd.f32 %v2238_v16, %v2230_v15  ;;  %v5753_v0 = vld [vmem:[%s6271_s14 + $0x13c] ss:$72 sps:$4 sm:$0xff]   ;;  %v5764_v34 = vld [vmem:[%s6271_s14 + $0x130] ss:$72 sps:$4 sm:$0xff]   ;;  %v5782_v7 = vld [vmem:[%s6271_s14 + $0xac] ss:$72 sps:$4 sm:$0xff]  }
 0x5c8   :  { %v2213_v18 = vmul.f32 0.9, %v2205_v14  ;;  %v2231_v5 = vadd.f32 %v2223_v3, %v2215_v44  ;;  %v2244_v27 = vadd.f32 %v2236_v21, %v2228_v19  ;;  %v5771_v6 = vld [vmem:[%s6271_s14 + $0x138] ss:$72 sps:$4 sm:$0xff]   ;;  %v5776_v38 = vld [vmem:[%s6271_s14 + $0xa4] ss:$72 sps:$4 sm:$0xff]  }
 0x5c9   :  { %v5790_v8 = vld [vmem:[%s6271_s14 + $0xa0] ss:$72 sps:$4 sm:$0xff]   ;;  %v5802_v9 = vld [vmem:[%s6271_s14 + $0x14] ss:$72 sps:$4 sm:$0xff]   ;;  %v5838_v44 = vld [vmem:[%s6271_s14 + $0x1d0] ss:$72 sps:$4 sm:$0xff]  }
 0x5ca   :  { %v2229_v24 = vadd.f32 %v2221_v20, %v2213_v18  ;;  %v2247_v26 = vadd.f32 %v2239_v17, %v2231_v5  ;;  %v5797_v1 = vld [vmem:[%s6271_s14 + $0xa8] ss:$72 sps:$4 sm:$0xff]   ;;  %v5808_v10 = vld [vmem:[%s6271_s14 + $0x1c] ss:$72 sps:$4 sm:$0xff]   ;;  %v5821_v12 = vld [vmem:[%s6271_s14 + $0x18] ss:$72 sps:$4 sm:$0xff]  }
 0x5cb   :  { %v5826_v3 = vld [vmem:[%s6271_s14 + $0x1d4] ss:$72 sps:$4 sm:$0xff]   ;;  %v5845_v14 = vld [vmem:[%s6271_s14 + $0x1d8] ss:$72 sps:$4 sm:$0xff]   ;;  %v5850_v15 = vld [vmem:[%s6271_s14 + $0x144] ss:$72 sps:$4 sm:$0xff]  }
 0x5cc   :  { %v2245_v40 = vadd.f32 %v2237_v22, %v2229_v24  ;;  %v2252_v28 = vpack.c.bf16 %v2247_v26, %v2246_v25  ;;  %v5856_v16 = vld [vmem:[%s6271_s14 + $0x14c] ss:$72 sps:$4 sm:$0xff]   ;;  %v5866_v17 = vld [vmem:[%s6271_s14 + $0x140] ss:$72 sps:$4 sm:$0xff]   ;;  %v5884_v20 = vld [vmem:[%s6271_s14 + $0xbc] ss:$72 sps:$4 sm:$0xff]  }
 0x5cd   :  { %v5873_v18 = vld [vmem:[%s6271_s14 + $0x148] ss:$72 sps:$4 sm:$0xff]   ;;  %v5878_v19 = vld [vmem:[%s6271_s14 + $0xb4] ss:$72 sps:$4 sm:$0xff]   ;;  %v5899_v21 = vld [vmem:[%s6271_s14 + $0xb8] ss:$72 sps:$4 sm:$0xff]  }
 0x5ce   :  { %v2251_v46 = vpack.c.bf16 %v2245_v40, %v2244_v27  ;;  %4712 = vmatpush3.bf16.msra.mxu0 %v2252_v28  ;;  %v5892_v5 = vld [vmem:[%s6271_s14 + $0xb0] ss:$72 sps:$4 sm:$0xff]   ;;  %v5904_v22 = vld [vmem:[%s6271_s14 + $0x24] ss:$72 sps:$4 sm:$0xff]   ;;  %v5916_v25 = vld [vmem:[%s6271_s14 + $0x20] ss:$72 sps:$4 sm:$0xff]  }
 0x5cf   :  { %4713 = vmatprep.subr.bf16.mxu0 %v5040_v48  ;;  %v5910_v24 = vld [vmem:[%s6271_s14 + $0x2c] ss:$72 sps:$4 sm:$0xff]   ;;  %v5923_v26 = vld [vmem:[%s6271_s14 + $0x28] ss:$72 sps:$4 sm:$0xff]  }
 0x5d0   :  { %v5928_v27 = vld [vmem:[%s6271_s14 + $0x1e4] ss:$72 sps:$4 sm:$0xff]   ;;  %v5940_v28 = vld [vmem:[%s6271_s14 + $0x1e0] ss:$72 sps:$4 sm:$0xff]  }
 0x5d1   :  { %v5934_v40 = vld [vmem:[%s6271_s14 + $0x1ec] ss:$72 sps:$4 sm:$0xff]  }
 0x5d2   :  { %4714 = vmatpush3.bf16.msra.mxu0 %v2251_v46  ;;  %v5947_v46 = vld [vmem:[%s6271_s14 + $0x1e8] ss:$72 sps:$4 sm:$0xff]  }
 0x5d3   :  { %4715 = vmatprep.subr.bf16.mxu0 %v5040_v48 }
 0x5d6   :  { %4716 = vmatpush3.bf16.msra.mxu0 %v2250_v11  ;;  %v5814_v11 = vld [vmem:[%s6271_s14 + $0x10] ss:$72 sps:$4 sm:$0xff]  }
 0x5d7   :  { %4717 = vmatprep.subr.bf16.mxu0 %v5040_v48  ;;  %v5667_v48 = vld [vmem:[%s6271_s14 + $0x12c] ss:$72 sps:$4 sm:$0xff]  }
 0x5da   :  { %4718 = vmatpush3.bf16.msra.mxu0 %v2249_v13  ;;  %v5832_v13 = vld [vmem:[%s6271_s14 + $0x1dc] ss:$72 sps:$4 sm:$0xff]  }
 0x5db   :  { %2801 = vmatprep.subr.bf16.mxu0 %v5653_v42 }
 0x5dd   :  { %4720 = vmatmul.mubr.msk.bf16.vlgmr.msra.gmra.mxu0 %vm684_vm2, %v2248_v29  ;;  %v5952_v29 = vld [vmem:[%s6271_s14 + $0x154] ss:$72 sps:$4 sm:$0xff]  }
 0x5de   :  { %2802 = vmatpush1.bf16.msra.mxu0 %v5661_v30  ;;  %2825 = vmatprep.mubr.bf16.mxu0 %v6275_v23 }
 0x5df   :  { %2803 = vmatprep.subr.bf16.mxu0 %v5667_v48 }
 0x5e2   :  { %2804 = vmatpush1.bf16.msra.mxu0 %v5674_v31 }
 0x5e3   :  { %2805 = vmatprep.subr.bf16.mxu0 %v5681_v33 }
 0x5e6   :  { %2806 = vmatpush1.bf16.msra.mxu0 %v5687_v35 }
 0x5e7   :  { %2807 = vmatprep.subr.bf16.mxu0 %v5699_v39 }
 0x5ea   :  { %2808 = vmatpush1.bf16.msra.mxu0 %v5709_v43 }
 0x5eb   :  { %2883 = vmatprep.subr.bf16.mxu0 %v5723_v47 }
 0x69d   :  { %v5727_v57 = vpop.f32.mrf.mxu0 }
 0x69e   :  { %v2302_v32 = vadd.f32 %v2300_v56, %v5727_v57  ;;  %v3172_v58 = vadd.f32 %v3170_v55, %v5727_v57  ;;  %3174 = vrot.lane.b32.xlu0 %v5727_v57, %s5033_s18  ;;  %v5958_v55 = vld [vmem:[%s6271_s14 + $0x15c] ss:$72 sps:$4 sm:$0xff]   ;;  %v5968_v56 = vld [vmem:[%s6271_s14 + $0x150] ss:$72 sps:$4 sm:$0xff]  }
 0x69f   :  { %v4721_v59 = vpop.f32.mrf.mxu0 }
 0x6a0   :  { %v5738_v60 = vpack.c.bf16 %v2302_v32, %v2302_v32  ;;  %v3188_v62 = vpack.c.bf16 %v3172_v58, %v3172_v58  ;;  %v5975_v32 = vld [vmem:[%s6271_s14 + $0x158] ss:$72 sps:$4 sm:$0xff]   ;;  %v5980_v58 = vld [vmem:[%s6271_s14 + $0xc4] ss:$72 sps:$4 sm:$0xff]  }
 0x6a1   :  { %v2293_v2 = vpop.f32.mrf.mxu0  ;;  %6287 = vst [vmem:[#allocation15_spill] sm:$0xff] %v5980_v58  ;;  %v5986_v59 = vld [vmem:[%s6271_s14 + $0xcc] ss:$72 sps:$4 sm:$0xff]  }
 0x6a2   :  { %3262 = vrot.lane.b32.xlu1 %v3188_v62, %s5033_s18  ;;  %4249 = vmatmul.mubr.msk.bf16.vlgmr.msra.gmra.mxu1 %vm684_vm2, %v5738_v60  ;;  %6288 = vst [vmem:[#allocation16_spill] sm:$0xff] %v5986_v59  ;;  %v2304_v62 = vsel %vm2303_vm7, %v5727_v57, 0.0  ;;  %v5996_v2 = vld [vmem:[%s6271_s14 + $0xc0] ss:$72 sps:$4 sm:$0xff]   ;;  %v6008_v57 = vld [vmem:[%s6271_s14 + $0x34] ss:$72 sps:$4 sm:$0xff]  }
 0x6a3   :  { %4250 = vmatmul.mubr.msk.bf16.vlgmr.msra.gmra.mxu0 %vm684_vm2, %v5738_v60  ;;  %2843 = vmatpush1.bf16.msra.mxu1 %v5736_v36  ;;  %v4722_v4 = vpop.f32.mrf.mxu0  ;;  %6290 = vst [vmem:[#allocation18_spill] sm:$0xff] %v6008_v57 }
 0x6a4   :  { %2884 = vmatpush1.bf16.msra.mxu0 %v5743_v61  ;;  %2844 = vmatprep.subr.bf16.mxu1 %v5748_v63  ;;  %v6003_v4 = vld [vmem:[%s6271_s14 + $0xc8] ss:$72 sps:$4 sm:$0xff]  }
 0x6a5   :  { %2885 = vmatprep.subr.bf16.mxu0 %v5753_v0  ;;  %2866 = vmatprep.mubr.bf16.mxu1 %v6275_v23  ;;  %6289 = vst [vmem:[#allocation17_spill] sm:$0xff] %v6003_v4 }
 0x6a6   :  { %2907 = vmatprep.mubr.bf16.mxu0 %v6275_v23 }
 0x6a7   :  { %2845 = vmatpush1.bf16.msra.mxu1 %v5764_v34 }
 0x6a8   :  { %2886 = vmatpush1.bf16.msra.mxu0 %v5771_v6  ;;  %2846 = vmatprep.subr.bf16.mxu1 %v5776_v38 }
 0x6a9   :  { %2887 = vmatprep.subr.bf16.mxu0 %v5782_v7 }
 0x6ab   :  { %2847 = vmatpush1.bf16.msra.mxu1 %v5790_v8 }
 0x6ac   :  { %2888 = vmatpush1.bf16.msra.mxu0 %v5797_v1  ;;  %2848 = vmatprep.subr.bf16.mxu1 %v5802_v9 }
 0x6ad   :  { %2889 = vmatprep.subr.bf16.mxu0 %v5808_v10 }
 0x6af   :  { %2849 = vmatpush1.bf16.msra.mxu1 %v5814_v11 }
 0x6b0   :  { %2890 = vmatpush1.bf16.msra.mxu0 %v5821_v12  ;;  %2924 = vmatprep.subr.bf16.mxu1 %v5826_v3 }
 0x6b1   :  { %2965 = vmatprep.subr.bf16.mxu0 %v5832_v13 }
 0x6b2   :  { %4251 = vmatmul.mubr.msk.bf16.vlgmr.msra.gmra.mxu1 %vm684_vm2, %v5738_v60 }
 0x6b3   :  { %4252 = vmatmul.mubr.msk.bf16.vlgmr.msra.gmra.mxu0 %vm684_vm2, %v5738_v60  ;;  %2925 = vmatpush1.bf16.msra.mxu1 %v5838_v44 }
 0x6b4   :  { %2966 = vmatpush1.bf16.msra.mxu0 %v5845_v14  ;;  %2926 = vmatprep.subr.bf16.mxu1 %v5850_v15 }
 0x6b5   :  { %2967 = vmatprep.subr.bf16.mxu0 %v5856_v16  ;;  %2948 = vmatprep.mubr.bf16.mxu1 %v6275_v23 }
 0x6b6   :  { %2989 = vmatprep.mubr.bf16.mxu0 %v6275_v23 }
 0x6b7   :  { %2927 = vmatpush1.bf16.msra.mxu1 %v5866_v17 }
 0x6b8   :  { %2968 = vmatpush1.bf16.msra.mxu0 %v5873_v18  ;;  %2928 = vmatprep.subr.bf16.mxu1 %v5878_v19 }
 0x6b9   :  { %2969 = vmatprep.subr.bf16.mxu0 %v5884_v20 }
 0x6bb   :  { %2929 = vmatpush1.bf16.msra.mxu1 %v5892_v5 }
 0x6bc   :  { %2970 = vmatpush1.bf16.msra.mxu0 %v5899_v21  ;;  %2930 = vmatprep.subr.bf16.mxu1 %v5904_v22 }
 0x6bd   :  { %2971 = vmatprep.subr.bf16.mxu0 %v5910_v24 }
 0x6bf   :  { %2931 = vmatpush1.bf16.msra.mxu1 %v5916_v25 }
 0x6c0   :  { %2972 = vmatpush1.bf16.msra.mxu0 %v5923_v26  ;;  %3006 = vmatprep.subr.bf16.mxu1 %v5928_v27 }
 0x6c1   :  { %3047 = vmatprep.subr.bf16.mxu0 %v5934_v40 }
 0x6c2   :  { %4253 = vmatmul.mubr.msk.bf16.vlgmr.msra.gmra.mxu1 %vm684_vm2, %v5738_v60 }
 0x6c3   :  { %4254 = vmatmul.mubr.msk.bf16.vlgmr.msra.gmra.mxu0 %vm684_vm2, %v5738_v60  ;;  %3007 = vmatpush1.bf16.msra.mxu1 %v5940_v28 }
 0x6c4   :  { %3048 = vmatpush1.bf16.msra.mxu0 %v5947_v46  ;;  %3008 = vmatprep.subr.bf16.mxu1 %v5952_v29 }
 0x6c5   :  { %3049 = vmatprep.subr.bf16.mxu0 %v5958_v55  ;;  %3030 = vmatprep.mubr.bf16.mxu1 %v6275_v23 }
 0x6c6   :  { %3071 = vmatprep.mubr.bf16.mxu0 %v6275_v23  ;;  %2305 = vadd.xlane.f32.xlu1 %v2304_v62  ;;  %v6014_v62 = vld [vmem:[%s6271_s14 + $0x3c] ss:$72 sps:$4 sm:$0xff]   ;;  %v6020_v23 = vld [vmem:[%s6271_s14 + $0x30] ss:$72 sps:$4 sm:$0xff]  }
 0x6c7   :  { %3009 = vmatpush1.bf16.msra.mxu1 %v5968_v56 }
 0x6c8   :  { %3050 = vmatpush1.bf16.msra.mxu0 %v5975_v32  ;;  %3010 = vmatprep.subr.bf16.mxu1 %v5980_v58  ;;  %v6032_v58 = vld [vmem:[%s6271_s14 + $0x1f4] ss:$72 sps:$4 sm:$0xff]  }
 0x6c9   :  { %3051 = vmatprep.subr.bf16.mxu0 %v5986_v59  ;;  %v6027_v59 = vld [vmem:[%s6271_s14 + $0x38] ss:$72 sps:$4 sm:$0xff]   ;;  %6292 = vst [vmem:[#allocation20_spill] sm:$0xff] %v6032_v58 }
 0x6ca   :  { %6291 = vst [vmem:[#allocation19_spill] sm:$0xff] %v6027_v59 }
 0x6cb   :  { %3011 = vmatpush1.bf16.msra.mxu1 %v5996_v2 }
 0x6cc   :  { %3052 = vmatpush1.bf16.msra.mxu0 %v6003_v4  ;;  %3012 = vmatprep.subr.bf16.mxu1 %v6008_v57  ;;  %v6039_v4 = vld [vmem:[%s6271_s14 + $0x1f0] ss:$72 sps:$4 sm:$0xff]   ;;  %v6046_v57 = vld [vmem:[%s6271_s14 + $0x164] ss:$72 sps:$4 sm:$0xff]  }
 0x6cd   :  { %3053 = vmatprep.subr.bf16.mxu0 %v6014_v62  ;;  %6293 = vst [vmem:[#allocation21_spill] sm:$0xff] %v6039_v4  ;;  %6294 = vst [vmem:[#allocation22_spill] sm:$0xff] %v6046_v57 }
 0x6cf   :  { %3013 = vmatpush1.bf16.msra.mxu1 %v6020_v23 }
 0x6d0   :  { %3054 = vmatpush1.bf16.msra.mxu0 %v6027_v59  ;;  %3088 = vmatprep.subr.bf16.mxu1 %v6032_v58  ;;  %v6057_v59 = vld [vmem:[%s6271_s14 + $0x160] ss:$72 sps:$4 sm:$0xff]   ;;  %v6063_v58 = vld [vmem:[%s6271_s14 + $0xd4] ss:$72 sps:$4 sm:$0xff]  }
 0x6d1   :  { %3635 = vmatprep.subr.bf16.mxu0 %v5611_v50  ;;  %v6295_v50 = vmov 0  }
 0x6d2   :  { %4255 = vmatmul.mubr.msk.bf16.vlgmr.msra.gmra.mxu1 %vm684_vm2, %v5738_v60 }
 0x6d3   :  { %4256 = vmatmul.mubr.msk.bf16.vlgmr.msra.gmra.mxu0 %vm684_vm2, %v5738_v60  ;;  %3089 = vmatpush1.bf16.msra.mxu1 %v6039_v4  ;;  %v6073_v4 = vld [vmem:[%s6271_s14 + $0xd0] ss:$72 sps:$4 sm:$0xff]  }
 0x6d4   :  { %3090 = vmatprep.subr.bf16.mxu1 %v6046_v57  ;;  %3112 = vmatprep.mubr.bf16.mxu1 %v6295_v50  ;;  %v6079_v57 = vld [vmem:[%s6271_s14 + $0x44] ss:$72 sps:$4 sm:$0xff]  }
 0x6d5   :  { %3636 = vmatpush1.bf16.msra.mxu0 %v5606_v49  ;;  %3659 = vmatprep.mubr.bf16.mxu0 %v6295_v50  ;;  %v6087_v49 = vld [vmem:[%s6271_s14 + $0x40] ss:$72 sps:$4 sm:$0xff]  }
 0x6d6   :  { %3637 = vmatprep.subr.bf16.mxu0 %v5616_v51 }
 0x6d7   :  { %3091 = vmatpush1.bf16.msra.mxu1 %v6057_v59 }
 0x6d8   :  { %3092 = vmatprep.subr.bf16.mxu1 %v6063_v58 }
 0x6d9   :  { %3638 = vmatpush1.bf16.msra.mxu0 %v5623_v52 }
 0x6da   :  { %3639 = vmatprep.subr.bf16.mxu0 %v5629_v53 }
 0x6db   :  { %3093 = vmatpush1.bf16.msra.mxu1 %v6073_v4 }
 0x6dc   :  { %3094 = vmatprep.subr.bf16.mxu1 %v6079_v57 }
 0x6dd   :  { %3640 = vmatpush1.bf16.msra.mxu0 %v5635_v54  ;;  %v6296_v54 = vld [vmem:[#allocation15_spill] sm:$0xff] }
 0x6de   :  { %3641 = vmatprep.subr.bf16.mxu0 %v5694_v37  ;;  %v6303_v37 = vld [vmem:[#allocation22_spill] sm:$0xff] }
 0x6df   :  { %3095 = vmatpush1.bf16.msra.mxu1 %v6087_v49 }
 0x6e0   :  { %3676 = vmatprep.subr.bf16.mxu1 %v5653_v42  ;;  %v6297_v42 = vld [vmem:[#allocation16_spill] sm:$0xff] }
 0x6e1   :  { %3642 = vmatpush1.bf16.msra.mxu0 %v5704_v41 }
 0x6e2   :  { %4257 = vmatmul.mubr.msk.bf16.vlgmr.msra.gmra.mxu1 %vm684_vm2, %v5738_v60  ;;  %3717 = vmatprep.subr.bf16.mxu0 %v5718_v45 }
 0x6e3   :  { %3677 = vmatpush1.bf16.msra.mxu1 %v5661_v30  ;;  %3700 = vmatprep.mubr.bf16.mxu1 %v6295_v50  ;;  %v6298_v30 = vld [vmem:[#allocation17_spill] sm:$0xff] }
 0x6e4   :  { %3678 = vmatprep.subr.bf16.mxu1 %v5667_v48  ;;  %v6299_v48 = vld [vmem:[#allocation18_spill] sm:$0xff] }
 0x6e7   :  { %3679 = vmatpush1.bf16.msra.mxu1 %v5674_v31  ;;  %v6300_v31 = vld [vmem:[#allocation19_spill] sm:$0xff] }
 0x6e8   :  { %3680 = vmatprep.subr.bf16.mxu1 %v5681_v33  ;;  %v6301_v33 = vld [vmem:[#allocation20_spill] sm:$0xff] }
 0x6eb   :  { %3681 = vmatpush1.bf16.msra.mxu1 %v5687_v35  ;;  %v6302_v35 = vld [vmem:[#allocation21_spill] sm:$0xff] }
 0x6ec   :  { %3682 = vmatprep.subr.bf16.mxu1 %v5699_v39 }
 0x6ef   :  { %3683 = vmatpush1.bf16.msra.mxu1 %v5709_v43 }
 0x6f0   :  { %3758 = vmatprep.subr.bf16.mxu1 %v5723_v47 }
 0x710   :  { %v3175_v51 = vpop.permute.xlu0 %3174 }
 0x711   :  { %v3177_v52 = vsel %vm2303_vm7, %v3175_v51, 0.0 }
 0x712   :  { %3178 = vadd.xlane.f32.xlu0 %v3177_v52 }
 0x714   :  { %v6108_v53 = vpop.permute.xlu1 %3262 }
 0x715   :  { %4331 = vmatmul.mubr.msk.bf16.vlgmr.msra.gmra.mxu0 %vm684_vm2, %v6108_v53  ;;  %4332 = vmatmul.mubr.msk.bf16.vlgmr.msra.gmra.mxu1 %vm684_vm2, %v6108_v53 }
 0x716   :  { %3718 = vmatpush1.bf16.msra.mxu0 %v5736_v36  ;;  %3759 = vmatpush1.bf16.msra.mxu1 %v5743_v61 }
 0x717   :  { %3719 = vmatprep.subr.bf16.mxu0 %v5748_v63  ;;  %3760 = vmatprep.subr.bf16.mxu1 %v5753_v0 }
 0x718   :  { %3741 = vmatprep.mubr.bf16.mxu0 %v6295_v50  ;;  %3782 = vmatprep.mubr.bf16.mxu1 %v6295_v50 }
 0x71a   :  { %3720 = vmatpush1.bf16.msra.mxu0 %v5764_v34  ;;  %3761 = vmatpush1.bf16.msra.mxu1 %v5771_v6 }
 0x71b   :  { %3721 = vmatprep.subr.bf16.mxu0 %v5776_v38  ;;  %3762 = vmatprep.subr.bf16.mxu1 %v5782_v7 }
 0x71e   :  { %3722 = vmatpush1.bf16.msra.mxu0 %v5790_v8  ;;  %3763 = vmatpush1.bf16.msra.mxu1 %v5797_v1 }
 0x71f   :  { %3723 = vmatprep.subr.bf16.mxu0 %v5802_v9  ;;  %3764 = vmatprep.subr.bf16.mxu1 %v5808_v10 }
 0x722   :  { %3724 = vmatpush1.bf16.msra.mxu0 %v5814_v11  ;;  %3765 = vmatpush1.bf16.msra.mxu1 %v5821_v12 }
 0x723   :  { %3799 = vmatprep.subr.bf16.mxu0 %v5826_v3  ;;  %3840 = vmatprep.subr.bf16.mxu1 %v5832_v13 }
 0x725   :  { %4333 = vmatmul.mubr.msk.bf16.vlgmr.msra.gmra.mxu0 %vm684_vm2, %v6108_v53  ;;  %4334 = vmatmul.mubr.msk.bf16.vlgmr.msra.gmra.mxu1 %vm684_vm2, %v6108_v53 }
 0x726   :  { %3800 = vmatpush1.bf16.msra.mxu0 %v5838_v44  ;;  %3841 = vmatpush1.bf16.msra.mxu1 %v5845_v14 }
 0x727   :  { %3801 = vmatprep.subr.bf16.mxu0 %v5850_v15  ;;  %3842 = vmatprep.subr.bf16.mxu1 %v5856_v16 }
 0x728   :  { %3823 = vmatprep.mubr.bf16.mxu0 %v6295_v50  ;;  %3864 = vmatprep.mubr.bf16.mxu1 %v6295_v50 }
 0x72a   :  { %3802 = vmatpush1.bf16.msra.mxu0 %v5866_v17  ;;  %3843 = vmatpush1.bf16.msra.mxu1 %v5873_v18 }
 0x72b   :  { %3803 = vmatprep.subr.bf16.mxu0 %v5878_v19  ;;  %3844 = vmatprep.subr.bf16.mxu1 %v5884_v20 }
 0x72e   :  { %3804 = vmatpush1.bf16.msra.mxu0 %v5892_v5  ;;  %3845 = vmatpush1.bf16.msra.mxu1 %v5899_v21 }
 0x72f   :  { %3805 = vmatprep.subr.bf16.mxu0 %v5904_v22  ;;  %3846 = vmatprep.subr.bf16.mxu1 %v5910_v24 }
 0x732   :  { %3806 = vmatpush1.bf16.msra.mxu0 %v5916_v25  ;;  %3847 = vmatpush1.bf16.msra.mxu1 %v5923_v26 }
 0x733   :  { %3881 = vmatprep.subr.bf16.mxu0 %v5928_v27  ;;  %3922 = vmatprep.subr.bf16.mxu1 %v5934_v40 }
 0x735   :  { %4335 = vmatmul.mubr.msk.bf16.vlgmr.msra.gmra.mxu0 %vm684_vm2, %v6108_v53  ;;  %4336 = vmatmul.mubr.msk.bf16.vlgmr.msra.gmra.mxu1 %vm684_vm2, %v6108_v53 }
 0x736   :  { %3882 = vmatpush1.bf16.msra.mxu0 %v5940_v28  ;;  %3923 = vmatpush1.bf16.msra.mxu1 %v5947_v46 }
 0x737   :  { %3883 = vmatprep.subr.bf16.mxu0 %v5952_v29  ;;  %3924 = vmatprep.subr.bf16.mxu1 %v5958_v55 }
 0x738   :  { %3905 = vmatprep.mubr.bf16.mxu0 %v6295_v50  ;;  %3946 = vmatprep.mubr.bf16.mxu1 %v6295_v50 }
 0x73a   :  { %3884 = vmatpush1.bf16.msra.mxu0 %v5968_v56  ;;  %3925 = vmatpush1.bf16.msra.mxu1 %v5975_v32  ;;  %v3181_v56 = vld [vmem:[%s6270_s13] sm:$0xf] }
 0x73b   :  { %3885 = vmatprep.subr.bf16.mxu0 %v6296_v54  ;;  %3926 = vmatprep.subr.bf16.mxu1 %v6297_v42 }
 0x73e   :  { %3886 = vmatpush1.bf16.msra.mxu0 %v5996_v2  ;;  %3927 = vmatpush1.bf16.msra.mxu1 %v6298_v30 }
 0x73f   :  { %3887 = vmatprep.subr.bf16.mxu0 %v6299_v48  ;;  %3928 = vmatprep.subr.bf16.mxu1 %v6014_v62 }
 0x742   :  { %3888 = vmatpush1.bf16.msra.mxu0 %v6020_v23  ;;  %3929 = vmatpush1.bf16.msra.mxu1 %v6300_v31  ;;  %v2309_v23 = vld [vmem:[%s6270_s13] sm:$0xf] }
 0x743   :  { %3963 = vmatprep.subr.bf16.mxu0 %v6301_v33  ;;  %v2311_v39 = vrot.slane %v2309_v23, 4 }
 0x745   :  { %4337 = vmatmul.mubr.msk.bf16.vlgmr.msra.gmra.mxu0 %vm684_vm2, %v6108_v53  ;;  %4338 = vmatmul.mubr.msk.bf16.vlgmr.msra.gmra.mxu1 %vm684_vm2, %v6108_v53 }
 0x746   :  { %3964 = vmatpush1.bf16.msra.mxu0 %v6302_v35  ;;  %3987 = vmatprep.mubr.bf16.mxu0 %v6295_v50 }
 0x747   :  { %3965 = vmatprep.subr.bf16.mxu0 %v6303_v37 }
 0x74a   :  { %3966 = vmatpush1.bf16.msra.mxu0 %v6057_v59  ;;  %v3183_v59 = vrot.slane %v3181_v56, 4 }
 0x74b   :  { %3967 = vmatprep.subr.bf16.mxu0 %v6063_v58 }
 0x74e   :  { %3968 = vmatpush1.bf16.msra.mxu0 %v6073_v4 }
 0x74f   :  { %3969 = vmatprep.subr.bf16.mxu0 %v6079_v57  ;;  %v2306_v41 = vpop.xlane.xlu1 %2305 }
 0x750   :  { %v2308_v43 = vmul.f32 0.015625, %v2306_v41 }
 0x752   :  { %3970 = vmatpush1.bf16.msra.mxu0 %v6087_v49  ;;  %v2313_v45 = vadd.f32 %v2311_v39, %v2308_v43 }
 0x754   :  { %2315 = vst.msk [vmem:[%s6273_s16 - $0x4] sm:$0xf0] %vm2314_vm8, %v2313_v45 }
 0x755   :  { %4339 = vmatmul.mubr.msk.bf16.vlgmr.msra.gmra.mxu0 %vm684_vm2, %v6108_v53 }
 0x762   :  { %v2786_v47 = vpop.f32.mrf.mxu1 }
 0x763   :  { %v2827_v36 = vpop.f32.mrf.mxu0 }
 0x764   :  { %v2788_v60 = vpop.f32.mrf.mxu1 }
 0x765   :  { %v3139_v61 = vcombine.low %v2786_v47, %v2788_v60  ;;  %v2829_v63 = vpop.f32.mrf.mxu0 }
 0x766   :  { %v3140_v0 = vcombine.low %v2827_v36, %v2829_v63  ;;  %v2790_v34 = vpop.f32.mrf.mxu1 }
 0x767   :  { %3157 = vst [vmem:[%s6272_s15] sm:$0xff] %v3139_v61  ;;  %v2831_v6 = vpop.f32.mrf.mxu0 }
 0x768   :  { %3158 = vst [vmem:[%s6272_s15 + $0x8] sm:$0xff] %v3140_v0  ;;  %v2791_v38 = vpop.f32.mrf.mxu1 }
 0x769   :  { %v2832_v7 = vpop.f32.mrf.mxu0 }
 0x772   :  { %v2868_v8 = vpop.f32.mrf.mxu1 }
 0x773   :  { %v2909_v1 = vpop.f32.mrf.mxu0 }
 0x774   :  { %v2870_v9 = vpop.f32.mrf.mxu1 }
 0x775   :  { %v3141_v10 = vcombine.low %v2868_v8, %v2870_v9  ;;  %v2911_v11 = vpop.f32.mrf.mxu0 }
 0x776   :  { %v3142_v12 = vcombine.low %v2909_v1, %v2911_v11  ;;  %v2872_v3 = vpop.f32.mrf.mxu1 }
 0x777   :  { %3159 = vst [vmem:[%s6272_s15 + $0x10] sm:$0xff] %v3141_v10  ;;  %v2913_v13 = vpop.f32.mrf.mxu0 }
 0x778   :  { %3160 = vst [vmem:[%s6272_s15 + $0x18] sm:$0xff] %v3142_v12  ;;  %v2873_v44 = vpop.f32.mrf.mxu1 }
 0x779   :  { %v2914_v14 = vpop.f32.mrf.mxu0 }
 0x782   :  { %v2950_v15 = vpop.f32.mrf.mxu1 }
 0x783   :  { %v2991_v16 = vpop.f32.mrf.mxu0 }
 0x784   :  { %v2952_v17 = vpop.f32.mrf.mxu1 }
 0x785   :  { %v3143_v18 = vcombine.low %v2950_v15, %v2952_v17  ;;  %v2993_v19 = vpop.f32.mrf.mxu0 }
 0x786   :  { %v3144_v20 = vcombine.low %v2991_v16, %v2993_v19  ;;  %v2954_v5 = vpop.f32.mrf.mxu1 }
 0x787   :  { %3161 = vst [vmem:[%s6272_s15 + $0x20] sm:$0xff] %v3143_v18  ;;  %v2995_v21 = vpop.f32.mrf.mxu0 }
 0x788   :  { %3162 = vst [vmem:[%s6272_s15 + $0x28] sm:$0xff] %v3144_v20  ;;  %v2955_v22 = vpop.f32.mrf.mxu1 }
 0x789   :  { %v2996_v24 = vpop.f32.mrf.mxu0 }
 0x792   :  { %v3032_v25 = vpop.f32.mrf.mxu1 }
 0x793   :  { %v3073_v26 = vpop.f32.mrf.mxu0 }
 0x794   :  { %v3034_v27 = vpop.f32.mrf.mxu1 }
 0x795   :  { %v3145_v40 = vcombine.low %v3032_v25, %v3034_v27  ;;  %v3075_v28 = vpop.f32.mrf.mxu0 }
 0x796   :  { %v3146_v46 = vcombine.low %v3073_v26, %v3075_v28  ;;  %v3036_v29 = vpop.f32.mrf.mxu1 }
 0x797   :  { %3163 = vst [vmem:[%s6272_s15 + $0x30] sm:$0xff] %v3145_v40  ;;  %v3077_v55 = vpop.f32.mrf.mxu0 }
 0x798   :  { %3164 = vst [vmem:[%s6272_s15 + $0x38] sm:$0xff] %v3146_v46  ;;  %v3037_v32 = vpop.f32.mrf.mxu1 }
 0x799   :  { %v3078_v58 = vpop.f32.mrf.mxu0 }
 0x79b   :  { %v3179_v2 = vpop.xlane.xlu0 %3178 }
 0x79c   :  { %v3180_v4 = vmul.f32 0.015625, %v3179_v2 }
 0x79e   :  { %v3185_v57 = vadd.f32 %v3183_v59, %v3180_v4 }
 0x7a0   :  { %4258 = vst.msk [vmem:[%s6273_s16] sm:$0xf0] %vm2314_vm8, %v3185_v57 }
 0x7a2   :  { %v3114_v62 = vpop.f32.mrf.mxu1 }
 0x7a4   :  { %v3116_v50 = vpop.f32.mrf.mxu1 }
 0x7a5   :  { %v3147_v49 = vcombine.low %v3114_v62, %v3116_v50 }
 0x7a6   :  { %v3118_v51 = vpop.f32.mrf.mxu1 }
 0x7a7   :  { %3165 = vst [vmem:[%s6272_s15 + $0x40] sm:$0xff] %v3147_v49 }
 0x7a8   :  { %v3119_v52 = vpop.f32.mrf.mxu1 }
 0x7d5   :  { %v3661_v53 = vpop.f32.mrf.mxu0  ;;  %v3702_v54 = vpop.f32.mrf.mxu1 }
 0x7d7   :  { %v3663_v42 = vpop.f32.mrf.mxu0  ;;  %v3704_v30 = vpop.f32.mrf.mxu1 }
 0x7d8   :  { %v4014_v48 = vcombine.low %v3661_v53, %v3663_v42  ;;  %v4015_v31 = vcombine.low %v3702_v54, %v3704_v30 }
 0x7d9   :  { %v3665_v33 = vpop.f32.mrf.mxu0  ;;  %v3706_v35 = vpop.f32.mrf.mxu1 }
 0x7da   :  { %4340 = vst [vmem:[%s6272_s15 + $0x48] sm:$0xff] %v4014_v48  ;;  %4341 = vst [vmem:[%s6272_s15 + $0x50] sm:$0xff] %v4015_v31 }
 0x7db   :  { %v3666_v37 = vpop.f32.mrf.mxu0  ;;  %v3707_v23 = vpop.f32.mrf.mxu1 }
 0x7e5   :  { %v3743_v39 = vpop.f32.mrf.mxu0  ;;  %v3784_v41 = vpop.f32.mrf.mxu1 }
 0x7e7   :  { %v3745_v43 = vpop.f32.mrf.mxu0  ;;  %v3786_v45 = vpop.f32.mrf.mxu1 }
 0x7e8   :  { %v4016_v47 = vcombine.low %v3743_v39, %v3745_v43  ;;  %v4017_v36 = vcombine.low %v3784_v41, %v3786_v45 }
 0x7e9   :  { %v3747_v60 = vpop.f32.mrf.mxu0  ;;  %v3788_v61 = vpop.f32.mrf.mxu1 }
 0x7ea   :  { %4342 = vst [vmem:[%s6272_s15 + $0x58] sm:$0xff] %v4016_v47  ;;  %4343 = vst [vmem:[%s6272_s15 + $0x60] sm:$0xff] %v4017_v36 }
 0x7eb   :  { %v3748_v63 = vpop.f32.mrf.mxu0  ;;  %v3789_v0 = vpop.f32.mrf.mxu1 }
 0x7f5   :  { %v3825_v34 = vpop.f32.mrf.mxu0  ;;  %v3866_v6 = vpop.f32.mrf.mxu1 }
 0x7f7   :  { %v3827_v38 = vpop.f32.mrf.mxu0  ;;  %v3868_v7 = vpop.f32.mrf.mxu1 }
 0x7f8   :  { %v4018_v8 = vcombine.low %v3825_v34, %v3827_v38  ;;  %v4019_v1 = vcombine.low %v3866_v6, %v3868_v7 }
 0x7f9   :  { %v3829_v9 = vpop.f32.mrf.mxu0  ;;  %v3870_v10 = vpop.f32.mrf.mxu1 }
 0x7fa   :  { %4344 = vst [vmem:[%s6272_s15 + $0x68] sm:$0xff] %v4018_v8  ;;  %4345 = vst [vmem:[%s6272_s15 + $0x70] sm:$0xff] %v4019_v1 }
 0x7fb   :  { %v3830_v11 = vpop.f32.mrf.mxu0  ;;  %v3871_v12 = vpop.f32.mrf.mxu1 }
 0x805   :  { %v3907_v3 = vpop.f32.mrf.mxu0  ;;  %v3948_v13 = vpop.f32.mrf.mxu1 }
 0x807   :  { %v3909_v44 = vpop.f32.mrf.mxu0  ;;  %v3950_v14 = vpop.f32.mrf.mxu1 }
 0x808   :  { %v4020_v15 = vcombine.low %v3907_v3, %v3909_v44  ;;  %v4021_v16 = vcombine.low %v3948_v13, %v3950_v14 }
 0x809   :  { %v3911_v17 = vpop.f32.mrf.mxu0  ;;  %v3952_v18 = vpop.f32.mrf.mxu1 }
 0x80a   :  { %4346 = vst [vmem:[%s6272_s15 + $0x78] sm:$0xff] %v4020_v15  ;;  %4347 = vst [vmem:[%s6272_s15 + $0x80] sm:$0xff] %v4021_v16 }
 0x80b   :  { %v3912_v19 = vpop.f32.mrf.mxu0  ;;  %v3953_v20 = vpop.f32.mrf.mxu1 }
 0x815   :  { %v3989_v5 = vpop.f32.mrf.mxu0 }
 0x817   :  { %v3991_v21 = vpop.f32.mrf.mxu0 }
 0x818   :  { %v4022_v22 = vcombine.low %v3989_v5, %v3991_v21 }
 0x819   :  { %v3993_v24 = vpop.f32.mrf.mxu0 }
 0x81a   :  { %4348 = vst [vmem:[%s6272_s15 + $0x88] sm:$0xff] %v4022_v22 }
 0x81b   :  { %v3994_v25 = vpop.f32.mrf.mxu0 }
 0x81c   :  { %4050 = vsyncpa [#allocation5], 1 }
 0x81d   :  { %4051 = vsyncpa [#allocation7], 1 }
 0x81e   :  { %4052 = vsyncpa [#allocation10], 1 }

</bundles_post_ra>
